<compile_context>
chip_gen: v7x
topology: tpu7x:2x2x1
jax: 0.10.0
libtpu: 0.0.40
codegen_flags: <defaults>
</compile_context>

<pallas_src>
import functools

import jax
import jax.numpy as jnp
import numpy as np
from jax.experimental import pallas as pl
from jax.experimental.pallas import tpu as pltpu


def protein_cnn_kernel(idx_ref, tab_ref, w1_ref, w2_ref, w3_ref,
                       p1_ref, p2_ref, p3_ref, out_ref, *, per_tap):
    """One block of Bt batch elements per grid step.

    idx_ref : (Bt, L, 1) int32 token ids
    tab_ref : (Vp, E)    bf16 embedding table (vocab padded to a multiple of 8)
    w{i}_ref: (K_i * C_in_i, C_out_i) bf16 im2col-reshaped conv weights
    p{i}_ref: (3, C_out_i) f32 rows = [conv bias, bn scale, bn shift]
    out_ref : (Bt, C3, L3) f32, NCW (channel-major) so the host reshape is free
    """
    Bt, L, _ = idx_ref.shape
    Vp = tab_ref.shape[0]
    C3, L3 = out_ref.shape[1], out_ref.shape[2]
    L3p = ((L3 + 127) // 128) * 128          # tile-aligned transpose source

    # Hoist grid-invariant loads out of the (unrolled) per-element loop; JAX
    # does not CSE broadcasts/loads across the unrolled iterations.
    tab = tab_ref[...]
    w1, w2, w3 = w1_ref[...], w2_ref[...], w3_ref[...]
    p1, p2, p3 = p1_ref[...], p2_ref[...], p3_ref[...]

    def conv_relu_bn(h_bf16, w, p, out_bf16):
        """valid Conv1d -> +bias -> ReLU -> eval BatchNorm1d.

        h_bf16 is bf16 so the im2col slab (or per-tap slices) feed the MXU
        directly with no f32 slab materialization.
        """
        lin, cin = h_bf16.shape
        k = w.shape[0] // cin
        lout = lin - k + 1
        if per_tap:
            # v5e: 128-deep MXU -> fused slab saves no passes; skip it and
            # accumulate K depth-cin matmuls in f32 (no slab writes at all).
            acc = jnp.zeros((lout, w.shape[1]), jnp.float32)
            for j in range(k):
                acc = acc + jnp.dot(h_bf16[j:j + lout, :],
                                    w[j * cin:(j + 1) * cin, :],
                                    preferred_element_type=jnp.float32)
        else:
            # v6e/v7x: 256-deep MXU -> single fused-slab matmul halves passes.
            # Each piece is `cin` (multiple of 128) lanes wide, so the concat
            # is vreg-granular (no lane shuffles), and it is bf16.
            cols = jnp.concatenate([h_bf16[j:j + lout, :] for j in range(k)],
                                   axis=1)
            acc = jnp.dot(cols, w, preferred_element_type=jnp.float32)
        bias, scale, shift = p[0:1, :], p[1:2, :], p[2:3, :]
        y = jnp.maximum(acc + bias, 0.0) * scale + shift     # f32 epilogue
        return y.astype(jnp.bfloat16) if out_bf16 else y

    for b in range(Bt):                      # static unroll over the batch block
        # --- fused nn.Embedding: one-hot @ table on the MXU ------------------
        ids = idx_ref[b]                                          # [L, 1] int32
        lanes = jax.lax.broadcasted_iota(jnp.int32, (L, Vp), 1)   # [L, Vp]
        onehot = (lanes == ids).astype(jnp.bfloat16)
        x = jnp.dot(onehot, tab,
                    preferred_element_type=jnp.float32).astype(jnp.bfloat16)

        h = conv_relu_bn(x, w1, p1, True)                         # bf16
        h = conv_relu_bn(h, w2, p2, True)                         # bf16
        h = conv_relu_bn(h, w3, p3, False)                        # [L3, C3] f32

        # --- emit NCW directly: tile-aligned transpose on the XLU ------------
        pad = L3p - L3
        if pad:
            h = jnp.concatenate([h, jnp.zeros((pad, C3), h.dtype)], axis=0)
        ht = h.T                                                  # [C3, L3p]
        out_ref[b] = ht[:, :L3]                                   # [C3, L3]


def _pick_block_b(B, max_bt=4):
    """Largest divisor of B that is <= max_bt while keeping grid size >= 2."""
    for bt in range(min(max_bt, B), 0, -1):
        if B % bt == 0 and (B // bt >= 2 or B < 2):
            return bt
    return 1


def _default_per_tap():
    """Use per-tap accumulation (no im2col slab) on v5e's 128-deep MXU."""
    try:
        kind = jax.devices()[0].device_kind.lower()
        return ("v5 lite" in kind) or ("v5e" in kind)
    except Exception:  # pragma: no cover - conservative fallback
        return False


def protein_cnn_forward(tokens, params, block_b=None, per_tap=None):
    """tokens: [B, L] int32 token ids.  Returns the PyTorch module's output."""
    emb = params["embedding"]                       # [26, E] f32
    w1, w2, w3 = params["w1"], params["w2"], params["w3"]   # [K, Cin, Cout]
    B, L = tokens.shape
    V, E = emb.shape
    K1, _, C1 = w1.shape
    K2, _, C2 = w2.shape
    K3, _, C3 = w3.shape
    L1 = L - K1 + 1
    L2 = L1 - K2 + 1
    L3 = L2 - K3 + 1

    Bt = _pick_block_b(B) if block_b is None else block_b
    assert B % Bt == 0
    if per_tap is None:
        per_tap = _default_per_tap()

    # ---- host-side parameter packing (KB-scale layout plumbing only) --------
    vpad = (-V) % 8
    tab = jnp.pad(emb, ((0, vpad), (0, 0))).astype(jnp.bfloat16)     # [Vp, E]
    w1_2d = w1.reshape(K1 * E, C1).astype(jnp.bfloat16)
    w2_2d = w2.reshape(K2 * C1, C2).astype(jnp.bfloat16)
    w3_2d = w3.reshape(K3 * C2, C3).astype(jnp.bfloat16)

    def bn_pack(b, gamma, beta, mean, var, eps=1e-5):
        scale = gamma / jnp.sqrt(var + eps)
        shift = beta - mean * scale
        return jnp.stack([b, scale, shift]).astype(jnp.float32)      # [3, C]

    p1 = bn_pack(params["b1"], params["g1"], params["be1"], params["m1"], params["v1"])
    p2 = bn_pack(params["b2"], params["g2"], params["be2"], params["m2"], params["v2"])
    p3 = bn_pack(params["b3"], params["g3"], params["be3"], params["m3"], params["v3"])

    idx = tokens.astype(jnp.int32).reshape(B, L, 1)

    kernel = functools.partial(protein_cnn_kernel, per_tap=per_tap)

    out_ncw = pl.pallas_call(
        kernel,
        out_shape=jax.ShapeDtypeStruct((B, C3, L3), jnp.float32),
        grid_spec=pltpu.PrefetchScalarGridSpec(
            num_scalar_prefetch=0,
            grid=(B // Bt,),
            in_specs=[
                pl.BlockSpec((Bt, L, 1), lambda b: (b, 0, 0)),        # token ids
                pl.BlockSpec(tab.shape, lambda b: (0, 0)),            # embedding
                pl.BlockSpec(w1_2d.shape, lambda b: (0, 0)),          # conv1 weight
                pl.BlockSpec(w2_2d.shape, lambda b: (0, 0)),          # conv2 weight
                pl.BlockSpec(w3_2d.shape, lambda b: (0, 0)),          # conv3 weight
                pl.BlockSpec((3, C1), lambda b: (0, 0)),              # bias/bn layer1
                pl.BlockSpec((3, C2), lambda b: (0, 0)),              # bias/bn layer2
                pl.BlockSpec((3, C3), lambda b: (0, 0)),              # bias/bn layer3
            ],
            out_specs=pl.BlockSpec((Bt, C3, L3), lambda b: (b, 0, 0)),
        ),
        compiler_params=pltpu.CompilerParams(
            dimension_semantics=("parallel",),
            vmem_limit_bytes=48 * 1024 * 1024),
    )(idx, tab, w1_2d, w2_2d, w3_2d, p1, p2, p3)

    # PyTorch epilogue: `v.view(B, L3, -1)` is applied to the contiguous NCW
    # tensor [B, C3, L3], i.e. it is a raw memory reshape, NOT a transpose.
    # The kernel already emits NCW, so this is a free bitcast-style reshape.
    return out_ncw.reshape(B, L3, C3)


def protein_cnn_reference(tokens, params):
    """Pure-JAX mirror of the PyTorch forward (eval mode), same mixed precision."""
    emb = params["embedding"].astype(jnp.bfloat16)
    x = emb[tokens]                                  # [B, L, E] bf16

    def layer(h_bf16, w, b, gamma, beta, mean, var, out_bf16, eps=1e-5):
        K, cin, cout = w.shape
        lout = h_bf16.shape[1] - K + 1
        cols = jnp.concatenate([h_bf16[:, j:j + lout, :] for j in range(K)],
                               axis=-1)
        acc = jnp.einsum("blc,co->blo",
                         cols,
                         w.reshape(K * cin, cout).astype(jnp.bfloat16),
                         preferred_element_type=jnp.float32)
        scale = gamma / jnp.sqrt(var + eps)
        shift = beta - mean * scale
        y = jnp.maximum(acc + b, 0.0) * scale + shift
        return y.astype(jnp.bfloat16) if out_bf16 else y

    h = layer(x, params["w1"], params["b1"], params["g1"], params["be1"],
              params["m1"], params["v1"], True)
    h = layer(h, params["w2"], params["b2"], params["g2"], params["be2"],
              params["m2"], params["v2"], True)
    h = layer(h, params["w3"], params["b3"], params["g3"], params["be3"],
              params["m3"], params["v3"], False)
    B, L3, C3 = h.shape
    out_ncw = jnp.swapaxes(h, 1, 2)                  # [B, C3, L3]
    return out_ncw.reshape(B, L3, C3)                # PyTorch .view semantics


def init_params(key, embedding_dim, num_filters, kernel_size):
    """Deterministic PyTorch-style init (eval-mode BN with non-trivial stats)."""
    in_ch = [embedding_dim] + list(num_filters)
    keys = iter(jax.random.split(key, 19))
    emb = jax.random.normal(next(keys), (26, embedding_dim), jnp.float32)
    emb = emb.at[0].set(0.0)                         # padding_idx=0 -> zero row
    params = {"embedding": emb}
    for i in range(3):
        cin, cout, kern = in_ch[i], in_ch[i + 1], kernel_size[i]
        bound = 1.0 / np.sqrt(cin * kern)
        params[f"w{i+1}"] = jax.random.uniform(next(keys), (kern, cin, cout),
                                               jnp.float32, -bound, bound)
        params[f"b{i+1}"] = jax.random.uniform(next(keys), (cout,),
                                               jnp.float32, -bound, bound)
        params[f"g{i+1}"] = jax.random.uniform(next(keys), (cout,),
                                               jnp.float32, 0.5, 1.5)
        params[f"be{i+1}"] = 0.1 * jax.random.normal(next(keys), (cout,), jnp.float32)
        params[f"m{i+1}"] = 0.1 * jax.random.normal(next(keys), (cout,), jnp.float32)
        params[f"v{i+1}"] = jax.random.uniform(next(keys), (cout,),
                                               jnp.float32, 0.5, 1.5)
    return params


if __name__ == "__main__":
    # Small but lane-dense test config (channels are multiples of 128 so the MXU
    # contraction is full-depth and the per-layer slab concat is vreg-granular).
    B, L = 2, 32
    EMBEDDING_DIM = 128
    NUM_FILTERS = [128, 128, 128]
    KERNEL_SIZE = [3, 6, 9]

    key = jax.random.PRNGKey(0)
    pkey, tkey = jax.random.split(key)
    params = init_params(pkey, EMBEDDING_DIM, NUM_FILTERS, KERNEL_SIZE)

    # token ids in [0, 26), matching nn.Embedding(26, ...)
    tokens = jax.random.randint(tkey, (B, L), 0, 26, dtype=jnp.int32)

    out = protein_cnn_forward(tokens, params)
    out = jax.block_until_ready(out)

    L3 = L - sum(k - 1 for k in KERNEL_SIZE)
    assert out.shape == (B, L3, NUM_FILTERS[-1]), out.shape

    ref = protein_cnn_reference(tokens, params)
    np.testing.assert_allclose(np.asarray(out), np.asarray(ref),
                               rtol=2e-2, atol=2e-2)
    print("KERNEL_OK")
</pallas_src>

<mosaic_0001>
module attributes {stable_mosaic.version = 11 : i64} {
  func.func @protein_cnn_kernel(%arg0: i32, %arg1: memref<1x32x1xi32, #tpu.memory_space<vmem>>, %arg2: memref<32x128xbf16, #tpu.memory_space<vmem>>, %arg3: memref<384x128xbf16, #tpu.memory_space<vmem>>, %arg4: memref<768x128xbf16, #tpu.memory_space<vmem>>, %arg5: memref<1152x128xbf16, #tpu.memory_space<vmem>>, %arg6: memref<3x128xf32, #tpu.memory_space<vmem>>, %arg7: memref<3x128xf32, #tpu.memory_space<vmem>>, %arg8: memref<3x128xf32, #tpu.memory_space<vmem>>, %arg9: memref<1x128x17xf32, #tpu.memory_space<vmem>>) attributes {dimension_semantics = [#tpu.dimension_semantics<parallel>], iteration_bounds = array<i64: 2>, scalar_prefetch = 0 : i64, scratch_operands = 0 : i64, tpu.core_type = #tpu.core_type<tc>, window_params = [{transform_indices = @transform_0, window_bounds = array<i64: 1, 32, 1>}, {pipeline_mode = #tpu.pipeline_mode<synchronous>, transform_indices = @transform_1, window_bounds = array<i64: 32, 128>}, {pipeline_mode = #tpu.pipeline_mode<synchronous>, transform_indices = @transform_2, window_bounds = array<i64: 384, 128>}, {pipeline_mode = #tpu.pipeline_mode<synchronous>, transform_indices = @transform_3, window_bounds = array<i64: 768, 128>}, {pipeline_mode = #tpu.pipeline_mode<synchronous>, transform_indices = @transform_4, window_bounds = array<i64: 1152, 128>}, {pipeline_mode = #tpu.pipeline_mode<synchronous>, transform_indices = @transform_5, window_bounds = array<i64: 3, 128>}, {pipeline_mode = #tpu.pipeline_mode<synchronous>, transform_indices = @transform_6, window_bounds = array<i64: 3, 128>}, {pipeline_mode = #tpu.pipeline_mode<synchronous>, transform_indices = @transform_7, window_bounds = array<i64: 3, 128>}, {transform_indices = @transform_8, window_bounds = array<i64: 1, 128, 17>}]} {
    %c0 = arith.constant 0 : index
    %c0_0 = arith.constant 0 : index
    %0 = vector.load %arg2[%c0, %c0_0] : memref<32x128xbf16, #tpu.memory_space<vmem>>, vector<32x128xbf16>
    %c0_1 = arith.constant 0 : index
    %c0_2 = arith.constant 0 : index
    %1 = vector.load %arg3[%c0_1, %c0_2] : memref<384x128xbf16, #tpu.memory_space<vmem>>, vector<384x128xbf16>
    %c0_3 = arith.constant 0 : index
    %c0_4 = arith.constant 0 : index
    %2 = vector.load %arg4[%c0_3, %c0_4] : memref<768x128xbf16, #tpu.memory_space<vmem>>, vector<768x128xbf16>
    %c0_5 = arith.constant 0 : index
    %c0_6 = arith.constant 0 : index
    %3 = vector.load %arg5[%c0_5, %c0_6] : memref<1152x128xbf16, #tpu.memory_space<vmem>>, vector<1152x128xbf16>
    %c0_7 = arith.constant 0 : index
    %c0_8 = arith.constant 0 : index
    %4 = vector.load %arg6[%c0_7, %c0_8] : memref<3x128xf32, #tpu.memory_space<vmem>>, vector<3x128xf32>
    %c0_9 = arith.constant 0 : index
    %c0_10 = arith.constant 0 : index
    %5 = vector.load %arg7[%c0_9, %c0_10] : memref<3x128xf32, #tpu.memory_space<vmem>>, vector<3x128xf32>
    %c0_11 = arith.constant 0 : index
    %c0_12 = arith.constant 0 : index
    %6 = vector.load %arg8[%c0_11, %c0_12] : memref<3x128xf32, #tpu.memory_space<vmem>>, vector<3x128xf32>
    %c0_13 = arith.constant 0 : index
    %c0_14 = arith.constant 0 : index
    %c0_15 = arith.constant 0 : index
    %7 = vector.load %arg1[%c0_13, %c0_14, %c0_15] : memref<1x32x1xi32, #tpu.memory_space<vmem>>, vector<1x32x1xi32>
    %8 = vector.shape_cast %7 : vector<1x32x1xi32> to vector<32x1xi32>
    %9 = tpu.iota {dimensions = array<i32: 1>} : vector<32x32xi32>
    %10 = vector.broadcast %8 : vector<32x1xi32> to vector<32x32xi32>
    %11 = arith.cmpi eq, %9, %10 : vector<32x32xi32>
    %12 = arith.extui %11 : vector<32x32xi1> to vector<32x32xi32>
    %13 = arith.sitofp %12 : vector<32x32xi32> to vector<32x32xf32>
    %14 = arith.truncf %13 : vector<32x32xf32> to vector<32x32xbf16>
    %cst = arith.constant dense<0.000000e+00> : vector<32x128xf32>
    %15 = tpu.matmul %14, %0, %cst {dimension_numbers = #tpu.dot_dimension_numbers<[1], [0], [0], [1], [0, 0, 1, 1], [], []>} : vector<32x32xbf16>, vector<32x128xbf16>, vector<32x128xf32> -> vector<32x128xf32>
    %16 = arith.truncf %15 : vector<32x128xf32> to vector<32x128xbf16>
    %17 = vector.extract_strided_slice %16 {offsets = [0, 0], sizes = [30, 128], strides = [1, 1]} : vector<32x128xbf16> to vector<30x128xbf16>
    %18 = vector.extract_strided_slice %16 {offsets = [1, 0], sizes = [30, 128], strides = [1, 1]} : vector<32x128xbf16> to vector<30x128xbf16>
    %19 = vector.extract_strided_slice %16 {offsets = [2, 0], sizes = [30, 128], strides = [1, 1]} : vector<32x128xbf16> to vector<30x128xbf16>
    %20 = tpu.concatenate %17, %18, %19 in 1 : vector<30x128xbf16>, vector<30x128xbf16>, vector<30x128xbf16> -> vector<30x384xbf16>
    %cst_16 = arith.constant dense<0.000000e+00> : vector<30x128xf32>
    %21 = tpu.matmul %20, %1, %cst_16 {dimension_numbers = #tpu.dot_dimension_numbers<[1], [0], [0], [1], [0, 0, 1, 1], [], []>} : vector<30x384xbf16>, vector<384x128xbf16>, vector<30x128xf32> -> vector<30x128xf32>
    %22 = vector.extract_strided_slice %4 {offsets = [0, 0], sizes = [1, 128], strides = [1, 1]} : vector<3x128xf32> to vector<1x128xf32>
    %23 = vector.extract_strided_slice %4 {offsets = [1, 0], sizes = [1, 128], strides = [1, 1]} : vector<3x128xf32> to vector<1x128xf32>
    %24 = vector.extract_strided_slice %4 {offsets = [2, 0], sizes = [1, 128], strides = [1, 1]} : vector<3x128xf32> to vector<1x128xf32>
    %25 = vector.broadcast %22 : vector<1x128xf32> to vector<30x128xf32>
    %26 = arith.addf %21, %25 : vector<30x128xf32>
    %cst_17 = arith.constant 0.000000e+00 : f32
    %27 = vector.broadcast %cst_17 : f32 to vector<30x128xf32>
    %28 = arith.maximumf %26, %27 : vector<30x128xf32>
    %29 = vector.broadcast %23 : vector<1x128xf32> to vector<30x128xf32>
    %30 = arith.mulf %28, %29 : vector<30x128xf32>
    %31 = vector.broadcast %24 : vector<1x128xf32> to vector<30x128xf32>
    %32 = arith.addf %30, %31 : vector<30x128xf32>
    %33 = arith.truncf %32 : vector<30x128xf32> to vector<30x128xbf16>
    %34 = vector.extract_strided_slice %33 {offsets = [0, 0], sizes = [25, 128], strides = [1, 1]} : vector<30x128xbf16> to vector<25x128xbf16>
    %35 = vector.extract_strided_slice %33 {offsets = [1, 0], sizes = [25, 128], strides = [1, 1]} : vector<30x128xbf16> to vector<25x128xbf16>
    %36 = vector.extract_strided_slice %33 {offsets = [2, 0], sizes = [25, 128], strides = [1, 1]} : vector<30x128xbf16> to vector<25x128xbf16>
    %37 = vector.extract_strided_slice %33 {offsets = [3, 0], sizes = [25, 128], strides = [1, 1]} : vector<30x128xbf16> to vector<25x128xbf16>
    %38 = vector.extract_strided_slice %33 {offsets = [4, 0], sizes = [25, 128], strides = [1, 1]} : vector<30x128xbf16> to vector<25x128xbf16>
    %39 = vector.extract_strided_slice %33 {offsets = [5, 0], sizes = [25, 128], strides = [1, 1]} : vector<30x128xbf16> to vector<25x128xbf16>
    %40 = tpu.concatenate %34, %35, %36, %37, %38, %39 in 1 : vector<25x128xbf16>, vector<25x128xbf16>, vector<25x128xbf16>, vector<25x128xbf16>, vector<25x128xbf16>, vector<25x128xbf16> -> vector<25x768xbf16>
    %cst_18 = arith.constant dense<0.000000e+00> : vector<25x128xf32>
    %41 = tpu.matmul %40, %2, %cst_18 {dimension_numbers = #tpu.dot_dimension_numbers<[1], [0], [0], [1], [0, 0, 1, 1], [], []>} : vector<25x768xbf16>, vector<768x128xbf16>, vector<25x128xf32> -> vector<25x128xf32>
    %42 = vector.extract_strided_slice %5 {offsets = [0, 0], sizes = [1, 128], strides = [1, 1]} : vector<3x128xf32> to vector<1x128xf32>
    %43 = vector.extract_strided_slice %5 {offsets = [1, 0], sizes = [1, 128], strides = [1, 1]} : vector<3x128xf32> to vector<1x128xf32>
    %44 = vector.extract_strided_slice %5 {offsets = [2, 0], sizes = [1, 128], strides = [1, 1]} : vector<3x128xf32> to vector<1x128xf32>
    %45 = vector.broadcast %42 : vector<1x128xf32> to vector<25x128xf32>
    %46 = arith.addf %41, %45 : vector<25x128xf32>
    %cst_19 = arith.constant 0.000000e+00 : f32
    %47 = vector.broadcast %cst_19 : f32 to vector<25x128xf32>
    %48 = arith.maximumf %46, %47 : vector<25x128xf32>
    %49 = vector.broadcast %43 : vector<1x128xf32> to vector<25x128xf32>
    %50 = arith.mulf %48, %49 : vector<25x128xf32>
    %51 = vector.broadcast %44 : vector<1x128xf32> to vector<25x128xf32>
    %52 = arith.addf %50, %51 : vector<25x128xf32>
    %53 = arith.truncf %52 : vector<25x128xf32> to vector<25x128xbf16>
    %54 = vector.extract_strided_slice %53 {offsets = [0, 0], sizes = [17, 128], strides = [1, 1]} : vector<25x128xbf16> to vector<17x128xbf16>
    %55 = vector.extract_strided_slice %53 {offsets = [1, 0], sizes = [17, 128], strides = [1, 1]} : vector<25x128xbf16> to vector<17x128xbf16>
    %56 = vector.extract_strided_slice %53 {offsets = [2, 0], sizes = [17, 128], strides = [1, 1]} : vector<25x128xbf16> to vector<17x128xbf16>
    %57 = vector.extract_strided_slice %53 {offsets = [3, 0], sizes = [17, 128], strides = [1, 1]} : vector<25x128xbf16> to vector<17x128xbf16>
    %58 = vector.extract_strided_slice %53 {offsets = [4, 0], sizes = [17, 128], strides = [1, 1]} : vector<25x128xbf16> to vector<17x128xbf16>
    %59 = vector.extract_strided_slice %53 {offsets = [5, 0], sizes = [17, 128], strides = [1, 1]} : vector<25x128xbf16> to vector<17x128xbf16>
    %60 = vector.extract_strided_slice %53 {offsets = [6, 0], sizes = [17, 128], strides = [1, 1]} : vector<25x128xbf16> to vector<17x128xbf16>
    %61 = vector.extract_strided_slice %53 {offsets = [7, 0], sizes = [17, 128], strides = [1, 1]} : vector<25x128xbf16> to vector<17x128xbf16>
    %62 = vector.extract_strided_slice %53 {offsets = [8, 0], sizes = [17, 128], strides = [1, 1]} : vector<25x128xbf16> to vector<17x128xbf16>
    %63 = tpu.concatenate %54, %55, %56, %57, %58, %59, %60, %61, %62 in 1 : vector<17x128xbf16>, vector<17x128xbf16>, vector<17x128xbf16>, vector<17x128xbf16>, vector<17x128xbf16>, vector<17x128xbf16>, vector<17x128xbf16>, vector<17x128xbf16>, vector<17x128xbf16> -> vector<17x1152xbf16>
    %cst_20 = arith.constant dense<0.000000e+00> : vector<17x128xf32>
    %64 = tpu.matmul %63, %3, %cst_20 {dimension_numbers = #tpu.dot_dimension_numbers<[1], [0], [0], [1], [0, 0, 1, 1], [], []>} : vector<17x1152xbf16>, vector<1152x128xbf16>, vector<17x128xf32> -> vector<17x128xf32>
    %65 = vector.extract_strided_slice %6 {offsets = [0, 0], sizes = [1, 128], strides = [1, 1]} : vector<3x128xf32> to vector<1x128xf32>
    %66 = vector.extract_strided_slice %6 {offsets = [1, 0], sizes = [1, 128], strides = [1, 1]} : vector<3x128xf32> to vector<1x128xf32>
    %67 = vector.extract_strided_slice %6 {offsets = [2, 0], sizes = [1, 128], strides = [1, 1]} : vector<3x128xf32> to vector<1x128xf32>
    %68 = vector.broadcast %65 : vector<1x128xf32> to vector<17x128xf32>
    %69 = arith.addf %64, %68 : vector<17x128xf32>
    %cst_21 = arith.constant 0.000000e+00 : f32
    %70 = vector.broadcast %cst_21 : f32 to vector<17x128xf32>
    %71 = arith.maximumf %69, %70 : vector<17x128xf32>
    %72 = vector.broadcast %66 : vector<1x128xf32> to vector<17x128xf32>
    %73 = arith.mulf %71, %72 : vector<17x128xf32>
    %74 = vector.broadcast %67 : vector<1x128xf32> to vector<17x128xf32>
    %75 = arith.addf %73, %74 : vector<17x128xf32>
    %cst_22 = arith.constant 0.000000e+00 : f32
    %76 = vector.broadcast %cst_22 : f32 to vector<111x128xf32>
    %77 = tpu.concatenate %75, %76 in 0 : vector<17x128xf32>, vector<111x128xf32> -> vector<128x128xf32>
    %78 = tpu.transpose %77, [1, 0] : vector<128x128xf32> -> vector<128x128xf32>
    %79 = vector.extract_strided_slice %78 {offsets = [0, 0], sizes = [128, 17], strides = [1, 1]} : vector<128x128xf32> to vector<128x17xf32>
    %c0_23 = arith.constant 0 : index
    %c0_24 = arith.constant 0 : index
    %c0_25 = arith.constant 0 : index
    %80 = vector.load %arg9[%c0_23, %c0_24, %c0_25] : memref<1x128x17xf32, #tpu.memory_space<vmem>>, vector<1x128x17xf32>
    %81 = vector.shape_cast %80 : vector<1x128x17xf32> to vector<128x17xf32>
    %82 = vector.shape_cast %79 : vector<128x17xf32> to vector<1x128x17xf32>
    tpu.vector_store %arg9[%c0_23, %c0_24, %c0_25], %82 {strides = array<i32>} : memref<1x128x17xf32, #tpu.memory_space<vmem>>, vector<1x128x17xf32>,
    return
  }
  func.func @transform_0(%arg0: i32) -> (i32, i32, i32) {
    %c0_i32 = arith.constant 0 : i32
    %c0_i32_0 = arith.constant 0 : i32
    %c0_i32_1 = arith.constant 0 : i32
    return %arg0, %c0_i32, %c0_i32_0 : i32, i32, i32
  }
  func.func @transform_1(%arg0: i32) -> (i32, i32) {
    %c0_i32 = arith.constant 0 : i32
    %c0_i32_0 = arith.constant 0 : i32
    %c0_i32_1 = arith.constant 0 : i32
    return %c0_i32, %c0_i32_0 : i32, i32
  }
  func.func @transform_2(%arg0: i32) -> (i32, i32) {
    %c0_i32 = arith.constant 0 : i32
    %c0_i32_0 = arith.constant 0 : i32
    %c0_i32_1 = arith.constant 0 : i32
    return %c0_i32, %c0_i32_0 : i32, i32
  }
  func.func @transform_3(%arg0: i32) -> (i32, i32) {
    %c0_i32 = arith.constant 0 : i32
    %c0_i32_0 = arith.constant 0 : i32
    %c0_i32_1 = arith.constant 0 : i32
    return %c0_i32, %c0_i32_0 : i32, i32
  }
  func.func @transform_4(%arg0: i32) -> (i32, i32) {
    %c0_i32 = arith.constant 0 : i32
    %c0_i32_0 = arith.constant 0 : i32
    %c0_i32_1 = arith.constant 0 : i32
    return %c0_i32, %c0_i32_0 : i32, i32
  }
  func.func @transform_5(%arg0: i32) -> (i32, i32) {
    %c0_i32 = arith.constant 0 : i32
    %c0_i32_0 = arith.constant 0 : i32
    %c0_i32_1 = arith.constant 0 : i32
    return %c0_i32, %c0_i32_0 : i32, i32
  }
  func.func @transform_6(%arg0: i32) -> (i32, i32) {
    %c0_i32 = arith.constant 0 : i32
    %c0_i32_0 = arith.constant 0 : i32
    %c0_i32_1 = arith.constant 0 : i32
    return %c0_i32, %c0_i32_0 : i32, i32
  }
  func.func @transform_7(%arg0: i32) -> (i32, i32) {
    %c0_i32 = arith.constant 0 : i32
    %c0_i32_0 = arith.constant 0 : i32
    %c0_i32_1 = arith.constant 0 : i32
    return %c0_i32, %c0_i32_0 : i32, i32
  }
  func.func @transform_8(%arg0: i32) -> (i32, i32, i32) {
    %c0_i32 = arith.constant 0 : i32
    %c0_i32_0 = arith.constant 0 : i32
    %c0_i32_1 = arith.constant 0 : i32
    return %arg0, %c0_i32, %c0_i32_0 : i32, i32, i32
  }
}

</mosaic_0001>

<bundles_post_ra>
// kernel: tpu_custom_call.1
= control target key start
LH: loop header
LB: loop body
LE: loop exit
PB: predicated region body
PF: predicated region fallthrough
CT: control target
= control target key end

     0   :  { %13 = vsyncpa [#allocation3], 0  ;;  %s3529_s0 = inlined_call_operand.vmem [shape: s32[2,32,1], index: 0, kind: input, shape index: {}]   ;;  %s3530_s1 = inlined_call_operand.vmem [shape: bf16[32,128], index: 1, kind: input, shape index: {}]   ;;  %s3531_s2 = inlined_call_operand.hbm [shape: bf16[384,128], index: 2, kind: input, shape index: {}]   ;;  %s3532_s3 = inlined_call_operand.hbm [shape: bf16[768,128], index: 3, kind: input, shape index: {}]   ;;  %s3533_s4 = inlined_call_operand.hbm [shape: bf16[1152,128], index: 4, kind: input, shape index: {}]   ;;  %s3534_s5 = inlined_call_operand.vmem [shape: f32[3,128], index: 5, kind: input, shape index: {}]   ;;  %s3535_s6 = inlined_call_operand.vmem [shape: f32[3,128], index: 6, kind: input, shape index: {}]   ;;  %s3536_s7 = inlined_call_operand.vmem [shape: f32[3,128], index: 7, kind: input, shape index: {}]   ;;  %s3537_s8 = inlined_call_operand.vmem [shape: f32[2,128,17], index: 8, kind: output, shape index: {}]  }
   0x1   :  { %14 = vsyncpa [#allocation5], 0  ;;  %s3261_s27 = smov 0  }
   0x2 LB: > { %s3267_s28 = sadd.s32 4294967295, %s3207_s27   ;;  %p2453_p0 = scmp.ge.s32.totalorder %s3207_s27, 1  ;;  %s3207_s27 = sphi %s3261_s27, %s20_s27  }
   0x3   : > { %p224_p1 = scmp.lt.s32.totalorder %s3207_s27, 3  ;;  %p3538_p2 = scmp.eq.s32.totalorder %s3267_s28, 0 }
   0x4   : > { %s3209_s30 = smov [#allocation4]   ;;  %s3210_s10 = smov [#allocation2]  }
   0x5   : > { %p3272_p3 = pnand %p2453_p0, %p224_p1  ;;  %s252_s9 = sshll.u32 %s3209_s30, 4  ;;  %s253_s9 = int_to_ptr.vmem [resolvable:$true] %s252_s9 }
   0x6   : > { %s239_s11 = sshll.u32 %s3210_s10, 4  ;;  %s3211_s13 = smov [#allocation6]   ;;  %s3284_s11 = int_to_ptr.vmem [resolvable:$true] %s239_s11 }
   0x7   : > { %s3540_s29 = scalar_select %p3272_p3, 1, 0 }
   0x8   : > { %p2930_p4 = pneg %p3272_p3  ;;  %s265_s14 = sshll.u32 %s3211_s13, 4  ;;  %s3286_s14 = int_to_ptr.vmem [resolvable:$true] %s265_s14 }
   0x9   : > { %s3109_s17 = scalar_lea.hbm %s3532_s3, 6144 }
   0xa   : > { %p3280_p5 = pnand %p3538_p2, %p2930_p4  ;;  %p3110_p6 = scmp.ne.s32.totalorder %s3532_s3, %s3109_s17 }
   0xb   : > { %p3116_p10 = scmp.lt.u32.totalorder %s3109_s17, %s3532_s3 }
   0xc   : > { %p3296_p7 = pneg %p3280_p5 }
   0xe   : > { %p3112_p8 = pnand %p3296_p7, %p3110_p6 }
  0x10   : > { %p3113_p9 = pneg %p3112_p8 }
  0x12   : > { %p3118_p11 = pnand %p3116_p10, %p3113_p9 }
  0x14   : > { %3121 = shalt.err (!%p3118_p11)
}
  0x15   : > { %s3122_s23 = scalar_lea.vmem %s253_s9, 6144  ;;  %p3130_p1 = scmp.lt.s32.totalorder %s253_s9, %s253_s9 }
  0x16   : > { %p3123_p12 = scmp.ne.s32.totalorder %s253_s9, %s3122_s23  ;;  %p3131_p4 = scmp.lt.s32.totalorder %s3122_s23, %s3122_s23 }
  0x18   : > { %p3125_p13 = pnand %p3123_p12, %p3296_p7  ;;  %p3132_p2 = por %p3131_p4, %p3130_p1 }
  0x1a   : > { %p3126_p0 = pneg %p3125_p13 }
  0x1c   : > { %p3133_p3 = pnand %p3132_p2, %p3126_p0 }
  0x1e   : > { %3136 = shalt.err (!%p3133_p3)
}
  0x1f   : > { %s3212_s24 = smov 64   ;;  %s3213_s25 = smov 4  }
  0x20   : > { %2936 = dma.hbm_to_vmem [thread:$0]  (!%p3280_p5), %s3532_s3, 6144, %s253_s9, [#allocation5], %s3212_s24, %s3212_s24, %s3213_s25  }
  0x21   : > { %s3137_s15 = scalar_lea.hbm %s3531_s2, 3072 }
  0x22   : > { %p3138_p2 = scmp.ne.s32.totalorder %s3531_s2, %s3137_s15  ;;  %p3144_p8 = scmp.lt.u32.totalorder %s3137_s15, %s3531_s2 }
  0x24   : > { %p3140_p3 = pnand %p3138_p2, %p3296_p7 }
  0x26   : > { %p3141_p6 = pneg %p3140_p3 }
  0x28   : > { %p3146_p9 = pnand %p3144_p8, %p3141_p6 }
  0x2a   : > { %3149 = shalt.err (!%p3146_p9)
}
  0x2b   : > { %s3150_s9 = scalar_lea.vmem %s3284_s11, 3072  ;;  %p3158_p13 = scmp.lt.s32.totalorder %s3284_s11, %s3284_s11 }
  0x2c   : > { %p3151_p10 = scmp.ne.s32.totalorder %s3284_s11, %s3150_s9  ;;  %p3159_p0 = scmp.lt.s32.totalorder %s3150_s9, %s3150_s9 }
  0x2e   : > { %p3153_p11 = pnand %p3151_p10, %p3296_p7  ;;  %p3160_p1 = por %p3159_p0, %p3158_p13 }
  0x30   : > { %p3154_p12 = pneg %p3153_p11 }
  0x32   : > { %p3161_p4 = pnand %p3160_p1, %p3154_p12 }
  0x34   : > { %3164 = shalt.err (!%p3161_p4)
}
  0x35   : > { %2933 = dma.hbm_to_vmem [thread:$0]  (!%p3280_p5), %s3531_s2, 3072, %s3284_s11, [#allocation3], %s3212_s24, %s3212_s24, %s3213_s25  }
  0x36   : > { %s3165_s30 = scalar_lea.hbm %s3533_s4, 9216 }
  0x37   : > { %p3166_p2 = scmp.ne.s32.totalorder %s3533_s4, %s3165_s30  ;;  %p3172_p8 = scmp.lt.u32.totalorder %s3165_s30, %s3533_s4 }
  0x39   : > { %p3168_p3 = pnand %p3166_p2, %p3296_p7 }
  0x3b   : > { %p3169_p6 = pneg %p3168_p3 }
  0x3d   : > { %p3174_p9 = pnand %p3172_p8, %p3169_p6 }
  0x3f   : > { %3177 = shalt.err (!%p3174_p9)
}
  0x40   : > { %s3178_s11 = scalar_lea.vmem %s3286_s14, 9216  ;;  %p3186_p13 = scmp.lt.s32.totalorder %s3286_s14, %s3286_s14 }
  0x41   : > { %p3179_p10 = scmp.ne.s32.totalorder %s3286_s14, %s3178_s11  ;;  %p3187_p0 = scmp.lt.s32.totalorder %s3178_s11, %s3178_s11 }
  0x43   : > { %p3181_p11 = pnand %p3179_p10, %p3296_p7  ;;  %p3188_p1 = por %p3187_p0, %p3186_p13 }
  0x45   : > { %p3182_p12 = pneg %p3181_p11 }
  0x47   : > { %p3189_p4 = pnand %p3188_p1, %p3182_p12 }
  0x49   : > { %3192 = shalt.err (!%p3189_p4)
}
  0x4a   : > { %2939 = dma.hbm_to_vmem [thread:$0]  (!%p3280_p5), %s3533_s4, 9216, %s3286_s14, [#allocation5], %s3212_s24, %s3212_s24, %s3213_s25  }
  0x4b   : > { %p3543_p2 = scmp.ne.s32.totalorder %s3540_s29, 0 }
  0x4c   : > { %p3544_p7 = scmp.eq.s32.totalorder (!%p3543_p2), %s3267_s28, 0 }
  0x4d   : > { %298 = sbr.rel (%p3543_p2) target bundleno = 1448 (0x5a8), region = 52 }
  0x54   : > { %3198 = dma.done.wait (%p3544_p7), [#allocation3], 3072   ;;  %p3545_p3 = pmov %p3544_p7 }
  0x56   : > { %3200 = vsyncadd (%p3545_p3), [#allocation3], 4294964224  ;;  %p3546_p6 = pmov %p3545_p3 }
  0x57   : > { %p3547_p8 = pmov %p3545_p3 }
  0x58   : > { %3202 = dma.done.wait (%p3546_p6), [#allocation5], 15360  }
  0x59   : > { %3204 = vsyncadd (%p3547_p8), [#allocation5], 4294951936  ;;  %p340_p9 = scmp.lt.s32.totalorder %s3267_s28, 1  ;;  %v3214_v0 = vmov 0   ;;  %v2963_v5 = vld [vmem:[%s3530_s1] sm:$0xff]   ;;  %v2964_v6 = vld [vmem:[%s3530_s1 + $0x8] sm:$0xff]   ;;  %v650_v18 = vlaneseq }
  0x5a   : > { %2962 = vset.pattern.permute.xlu1 %v3214_v0  ;;  %2961 = vset.pattern.permute.xlu0 %v3214_v0  ;;  %v2965_v7 = vld [vmem:[#allocation2 + $0x80] sm:$0xff]   ;;  %v2969_v10 = vld [vmem:[#allocation2 + $0x48] sm:$0xff]   ;;  %v2972_v12 = vld [vmem:[#allocation2 + $0x50] sm:$0xff]   ;;  %vm690_vm4 = vcmask 261120   ;;  %v3215_v24 = vmov 0.0   ;;  %vm768_vm5 = vcmask 1046528  }
  0x5b   : > { %s3549_s28 = smov (!%p340_p9, %s3267_s28), 1  ;;  %2870 = vmatprep.subr.bf16.mxu0 %v2963_v5  ;;  %v2966_v8 = vld [vmem:[#allocation2 + $0x40] sm:$0xff]   ;;  %v2971_v11 = vld [vmem:[#allocation2 + $0x8] sm:$0xff]   ;;  %v2974_v13 = vld [vmem:[#allocation2 + $0x10] sm:$0xff]   ;;  %v651_v19 = vand.u32 127, %v650_v18  ;;  %vm1076_vm7 = vcmask 1045504  }
  0x5c   : > { %s2620_s29 = sshll.u32 %s3549_s28, 5  ;;  %2871 = vmatpush3.bf16.msra.mxu0 %v2963_v5  ;;  %v2968_v9 = vld [vmem:[#allocation2] sm:$0xff]   ;;  %2626 = vmatprep.subr.bf16.mxu1 %v2966_v8  ;;  %v2975_v14 = vld [vmem:[#allocation2 + $0x58] sm:$0xff]   ;;  %v2967_v31 = vld [vmem:[#allocation2 + $0x88] sm:$0xff]   ;;  %vm748_vm6 = vsmask.f32 7424 }
  0x5d   : > { %s344_s20 = scalar_lea.vmem %s3529_s0, %s2620_s29  ;;  %2872 = vmatprep.subr.bf16.mxu0 %v2964_v6  ;;  %2627 = vmatpush3.bf16.msra.mxu1 %v2968_v9  ;;  %v2977_v15 = vld [vmem:[#allocation2 + $0x18] sm:$0xff]   ;;  %v2978_v16 = vld [vmem:[#allocation2 + $0x60] sm:$0xff]   ;;  %v2970_v32 = vld [vmem:[#allocation2 + $0x90] sm:$0xff]   ;;  %vm1066_vm8 = vsmask.f32 6400  ;;  %vm1599_vm10 = vcmask 1044480  }
  0x5e   : > { %v648_v1 = vld [vmem:[%s344_s20 + $0x10] sm:$0xff]  ;;  %v646_v2 = vld [vmem:[%s344_s20] sm:$0xff]  ;;  %v649_v3 = vld [vmem:[%s344_s20 + $0x18] sm:$0xff]  ;;  %2628 = vmatprep.subr.bf16.mxu1 %v2969_v10  ;;  %vm1082_vm9 = vsmask.f32 5376  ;;  %vm1615_vm12 = vcmask 1043456  }
  0x5f   : > { %659 = vperm.xlu1 %2962, %v648_v1   ;;  %653 = vperm.xlu0 %2961, %v646_v2   ;;  %v647_v4 = vld [vmem:[%s344_s20 + $0x8] sm:$0xff]  ;;  %v2980_v17 = vld [vmem:[#allocation2 + $0x20] sm:$0xff]   ;;  %v2973_v33 = vld [vmem:[#allocation2 + $0x98] sm:$0xff]   ;;  %vm1605_vm11 = vsmask.f32 4352  ;;  %vm2314_vm13 = vcmask 1040384  }
  0x60   : > { %2873 = vmatpush3.bf16.msra.mxu0 %v2964_v6  ;;  %v2976_v34 = vld [vmem:[#allocation2 + $0xa0] sm:$0xff]   ;;  %v2979_v35 = vld [vmem:[#allocation2 + $0xa8] sm:$0xff]   ;;  %v2982_v37 = vld [vmem:[#allocation2 + $0xb0] sm:$0xff]   ;;  %s2621_s13 = sshll.u32 %s3549_s28, 7  ;;  %vm2348_vm14 = vcmask 138240  }
  0x61   : > { %2878 = vmatprep.subr.bf16.mxu0 %v2965_v7  ;;  %2629 = vmatpush3.bf16.msra.mxu1 %v2971_v11  ;;  %v2981_v36 = vld [vmem:[#allocation2 + $0x68] sm:$0xff]   ;;  %v2984_v39 = vld [vmem:[#allocation2 + $0x70] sm:$0xff]   ;;  %v2985_v40 = vld [vmem:[#allocation2 + $0xb8] sm:$0xff]   ;;  %s3492_s11 = scalar_lea.vmem %s3537_s8, %s2621_s13 }
  0x62   : > { %2630 = vmatprep.subr.bf16.mxu1 %v2972_v12  ;;  %v2983_v38 = vld [vmem:[#allocation2 + $0x28] sm:$0xff]   ;;  %v2986_v41 = vld [vmem:[#allocation2 + $0x30] sm:$0xff]   ;;  %v2987_v42 = vld [vmem:[#allocation2 + $0x78] sm:$0xff]  }
  0x63   : > { %662 = vperm.xlu1 %2962, %v649_v3   ;;  %656 = vperm.xlu0 %2961, %v647_v4   ;;  %v2988_v43 = vld [vmem:[#allocation2 + $0x38] sm:$0xff]   ;;  %v2989_v62 = vld [vmem:[#allocation4 + $0x40] sm:$0xff]   ;;  %v2992_v1 = vld [vmem:[#allocation4 + $0x48] sm:$0xff]  }
  0x64   : > { %v2990_v63 = vld [vmem:[#allocation4] sm:$0xff]   ;;  %v2994_v3 = vld [vmem:[#allocation4 + $0x8] sm:$0xff]   ;;  %v2996_v5 = vld [vmem:[#allocation4 + $0x50] sm:$0xff]  }
  0x65   : > { %2631 = vmatpush3.bf16.msra.mxu1 %v2974_v13  ;;  %v2991_v0 = vld [vmem:[#allocation4 + $0xc0] sm:$0xff]   ;;  %v2995_v4 = vld [vmem:[#allocation4 + $0xc8] sm:$0xff]   ;;  %v2999_v8 = vld [vmem:[#allocation4 + $0xd0] sm:$0xff]  }
  0x66   : > { %2632 = vmatprep.subr.bf16.mxu1 %v2975_v14  ;;  %v2993_v2 = vld [vmem:[#allocation4 + $0x80] sm:$0xff]   ;;  %v2997_v6 = vld [vmem:[#allocation4 + $0x88] sm:$0xff]   ;;  %v3000_v9 = vld [vmem:[#allocation4 + $0x58] sm:$0xff]  }
  0x67   : > { %v3001_v10 = vld [vmem:[#allocation4 + $0x90] sm:$0xff]   ;;  %v3002_v11 = vld [vmem:[#allocation4 + $0x18] sm:$0xff]   ;;  %v3004_v13 = vld [vmem:[#allocation4 + $0x60] sm:$0xff]  }
  0x68   : > { %v3003_v12 = vld [vmem:[#allocation4 + $0xd8] sm:$0xff]  }
  0x69   : > { %2633 = vmatpush3.bf16.msra.mxu1 %v2977_v15  ;;  %v3005_v14 = vld [vmem:[#allocation4 + $0x98] sm:$0xff]   ;;  %v3006_v15 = vld [vmem:[#allocation4 + $0x20] sm:$0xff]  }
  0x6a   : > { %2634 = vmatprep.subr.bf16.mxu1 %v2978_v16  ;;  %v3007_v16 = vld [vmem:[#allocation4 + $0xe0] sm:$0xff]  }
  0x6d   : > { %2635 = vmatpush3.bf16.msra.mxu1 %v2980_v17  ;;  %v3008_v17 = vld [vmem:[#allocation4 + $0x68] sm:$0xff]  }
  0x6e   : > { %2636 = vmatprep.subr.bf16.mxu1 %v2981_v36  ;;  %v643_v36 = vld [vmem:[%s3534_s5] sm:$0x7] }
  0x71   : > { %2637 = vmatpush3.bf16.msra.mxu1 %v2983_v38 }
  0x72   : > { %2638 = vmatprep.subr.bf16.mxu1 %v2984_v39 }
  0x75   : > { %2639 = vmatpush3.bf16.msra.mxu1 %v2986_v41 }
  0x76   : > { %2640 = vmatprep.subr.bf16.mxu1 %v2987_v42 }
  0x79   : > { %2641 = vmatpush3.bf16.msra.mxu1 %v2988_v43 }
  0x7a   : > { %2664 = vmatprep.subr.bf16.mxu1 %v2989_v62 }
  0xde   : > { %v660_v20 = vpop.permute.xlu1 %659  ;;  %v654_v21 = vpop.permute.xlu0 %653 }
  0xdf   : > { %vm666_vm0 = vcmp.eq.s32.totalorder %v651_v19, %v660_v20  ;;  %vm664_vm1 = vcmp.eq.s32.totalorder %v651_v19, %v654_v21  ;;  %v3010_v20 = vld [vmem:[#allocation4 + $0x28] sm:$0xff]  }
  0xe0   : > { %v2468_v25 = vsel %vm666_vm0, 1.0, %v3215_v24  ;;  %v2466_v26 = vsel %vm664_vm1, 1.0, %v3215_v24  ;;  %v3011_v21 = vld [vmem:[#allocation4 + $0xe8] sm:$0xff]  }
  0xe2   : > { %v663_v22 = vpop.permute.xlu1 %662  ;;  %v657_v23 = vpop.permute.xlu0 %656 }
  0xe3   : > { %vm667_vm2 = vcmp.eq.s32.totalorder %v651_v19, %v663_v22  ;;  %vm665_vm3 = vcmp.eq.s32.totalorder %v651_v19, %v657_v23  ;;  %v3009_v19 = vld [vmem:[#allocation4 + $0xa0] sm:$0xff]   ;;  %v3012_v22 = vld [vmem:[#allocation4 + $0x70] sm:$0xff]   ;;  %v3013_v23 = vld [vmem:[#allocation4 + $0xa8] sm:$0xff]  }
  0xe4   : > { %v2469_v27 = vsel %vm667_vm2, 1.0, %v3215_v24  ;;  %v2467_v28 = vsel %vm665_vm3, 1.0, %v3215_v24  ;;  %v3014_v24 = vld [vmem:[#allocation4 + $0x30] sm:$0xff]  }
  0xe5   : > { %v677_v29 = vpack.c.bf16 %v2469_v27, %v2468_v25  ;;  %v676_v30 = vpack.c.bf16 %v2467_v28, %v2466_v26  ;;  %v3015_v25 = vld [vmem:[#allocation4 + $0xf0] sm:$0xff]   ;;  %v3016_v26 = vld [vmem:[#allocation4 + $0x78] sm:$0xff]  }
  0xe6   : > { %v3017_v27 = vld [vmem:[#allocation4 + $0xb0] sm:$0xff]   ;;  %v3018_v28 = vld [vmem:[#allocation4 + $0x38] sm:$0xff]  }
  0xe7   : > { %2874 = vmatprep.mubr.msk.bf16.mxu0 %vm690_vm4, %v676_v30  ;;  %v3020_v30 = vld [vmem:[#allocation4 + $0xb8] sm:$0xff]  }
  0xe8   : > { %2875 = vmatmul.mubr.msk.bf16.vlgmr.msra.gmra.mrb[0].mxu0 %vm690_vm4, %v677_v29  ;;  %v3019_v29 = vld [vmem:[#allocation4 + $0xf8] sm:$0xff]  }
  0xe9   : > { %2879 = vmatpush3.bf16.msra.mxu0 %v2965_v7  ;;  %v2998_v7 = vld [vmem:[#allocation4 + $0x10] sm:$0xff]  }
  0xea   : > { %2880 = vmatprep.subr.bf16.mxu0 %v2967_v31 }
  0xed   : > { %2881 = vmatpush3.bf16.msra.mxu0 %v2967_v31  ;;  %v3021_v31 = vld [vmem:[#allocation4 + $0x140] sm:$0xff]  }
  0xee   : > { %2882 = vmatprep.subr.bf16.mxu0 %v2970_v32 }
  0xf1   : > { %2883 = vmatpush3.bf16.msra.mxu0 %v2970_v32  ;;  %v775_v32 = vshrl.u32 %v650_v18, 7 }
  0xf2   : > { %2884 = vmatprep.subr.bf16.mxu0 %v2973_v33 }
  0xf3   : > { %v3401_v42 = vsub.s32 1, %v775_v32 }
  0xf5   : > { %2885 = vmatpush3.bf16.msra.mxu0 %v2973_v33 }
  0xf6   : > { %2886 = vmatprep.subr.bf16.mxu0 %v2976_v34 }
  0xf9   : > { %2887 = vmatpush3.bf16.msra.mxu0 %v2976_v34  ;;  %v3395_v34 = vsub.s32 0, %v775_v32 }
  0xfa   : > { %2888 = vmatprep.subr.bf16.mxu0 %v2979_v35 }
  0xfd   : > { %2889 = vmatpush3.bf16.msra.mxu0 %v2979_v35 }
  0xfe   : > { %2890 = vmatprep.subr.bf16.mxu0 %v2982_v37 }
 0x101   : > { %2891 = vmatpush3.bf16.msra.mxu0 %v2982_v37 }
 0x102   : > { %2892 = vmatprep.subr.bf16.mxu0 %v2985_v40 }
 0x105   : > { %2893 = vmatpush3.bf16.msra.mxu0 %v2985_v40  ;;  %v777_v40 = vrot.slane %v643_v36, %v3395_v34 }
 0x106   : > { %2692 = vmatprep.subr.bf16.mxu0 %v2991_v0 }
 0x1bb   : > { %v2876_v44 = vpop.f32.mrb[0].mxu0 }
 0x1bc   : > { %v731_v45 = vpop.f32.mrb[1].mxu0 }
 0x1bd   : > { %v2877_v46 = vpop.f32.mrb[2].mxu0 }
 0x1be   : > { %v747_v47 = vpack.c.bf16 %v2877_v46, %v2876_v44  ;;  %v734_v48 = vpop.f32.mrb[3].mxu0 }
 0x1bf   : > { %v746_v49 = vpack.c.bf16 %v734_v48, %v731_v45 }
 0x1c0   : > { %v770_v50 = vrot.slane %v747_v47, 1  ;;  %v757_v51 = vshll.u32 %v747_v47, 16  ;;  %v761_v59 = vshrl.u32 %v747_v47, 16 }
 0x1c1   : > { %v769_v52 = vrot.slane %v746_v49, 1  ;;  %v752_v53 = vshll.u32 %v746_v49, 16  ;;  %v750_v55 = vshrl.u32 %v746_v49, 16 }
 0x1c2   : > { %v759_v57 = vrot.slane %v757_v51, 1 }
 0x1c3   : > { %v771_v54 = vsel %vm768_vm5, %v769_v52, %v770_v50  ;;  %v754_v56 = vrot.slane %v752_v53, 1 }
 0x1c4   : > { %2894 = vmatprep.mubr.bf16.mxu0 %v771_v54  ;;  %v763_v61 = vor.u32 %v761_v59, %v759_v57 }
 0x1c5   : > { %2895 = vmatmul.mubr.bf16.vlgmr.msra.gmra.mrb[4].mxu0 %v770_v50  ;;  %v755_v58 = vor.u32 %v754_v56, %v750_v55 }
 0x1c6   : > { %2693 = vmatpush3.bf16.msra.mxu0 %v2993_v2 }
 0x1c7   : > { %v760_v60 = vsel %vm748_vm6, %v755_v58, %v759_v57  ;;  %2694 = vmatprep.subr.bf16.mxu0 %v2995_v4 }
 0x1c8   : > { %954 = vmatprep.mubr.bf16.mxu1 %v760_v60 }
 0x1c9   : > { %955 = vmatmul.mubr.bf16.vlgmr.msra.gmra.mrb[0].mxu1 %v746_v49  ;;  %v1027_v49 = vrot.slane %v643_v36, %v3401_v42 }
 0x1ca   : > { %962 = vmatprep.mubr.bf16.mxu1 %v763_v61  ;;  %2665 = vmatpush3.bf16.msra.mxu1 %v2990_v63 }
 0x1cb   : > { %2666 = vmatprep.subr.bf16.mxu1 %v2992_v1  ;;  %2695 = vmatpush3.bf16.msra.mxu0 %v2997_v6 }
 0x1cc   : > { %2696 = vmatprep.subr.bf16.mxu0 %v2999_v8 }
 0x1ce   : > { %2667 = vmatpush3.bf16.msra.mxu1 %v2994_v3 }
 0x1cf   : > { %2668 = vmatprep.subr.bf16.mxu1 %v2996_v5  ;;  %2697 = vmatpush3.bf16.msra.mxu0 %v3001_v10 }
 0x1d0   : > { %2698 = vmatprep.subr.bf16.mxu0 %v3003_v12 }
 0x1d1   : > { %963 = vmatmul.mubr.bf16.gmra.mrb[4].mxu1 %v747_v47  ;;  %v3403_v47 = vsub.s32 2, %v775_v32  ;;  %v3022_v32 = vld [vmem:[#allocation4 + $0x100] sm:$0xff]  }
 0x1d2   : > { %2669 = vmatpush3.bf16.msra.mxu1 %v2998_v7 }
 0x1d3   : > { %2670 = vmatprep.subr.bf16.mxu1 %v3000_v9  ;;  %2699 = vmatpush3.bf16.msra.mxu0 %v3005_v14  ;;  %v1035_v56 = vrot.slane %v643_v36, %v3403_v47 }
 0x1d4   : > { %2700 = vmatprep.subr.bf16.mxu0 %v3007_v16 }
 0x1d6   : > { %2671 = vmatpush3.bf16.msra.mxu1 %v3002_v11 }
 0x1d7   : > { %2672 = vmatprep.subr.bf16.mxu1 %v3004_v13  ;;  %2701 = vmatpush3.bf16.msra.mxu0 %v3009_v19 }
 0x1d8   : > { %2702 = vmatprep.subr.bf16.mxu0 %v3011_v21 }
 0x1da   : > { %2673 = vmatpush3.bf16.msra.mxu1 %v3006_v15 }
 0x1db   : > { %2674 = vmatprep.subr.bf16.mxu1 %v3008_v17  ;;  %2703 = vmatpush3.bf16.msra.mxu0 %v3013_v23 }
 0x1dc   : > { %2704 = vmatprep.subr.bf16.mxu0 %v3015_v25 }
 0x1de   : > { %2675 = vmatpush3.bf16.msra.mxu1 %v3010_v20 }
 0x1df   : > { %2676 = vmatprep.subr.bf16.mxu1 %v3012_v22  ;;  %2705 = vmatpush3.bf16.msra.mxu0 %v3017_v27 }
 0x1e0   : > { %2706 = vmatprep.subr.bf16.mxu0 %v3019_v29 }
 0x1e2   : > { %2677 = vmatpush3.bf16.msra.mxu1 %v3014_v24 }
 0x1e3   : > { %2678 = vmatprep.subr.bf16.mxu1 %v3016_v26  ;;  %2707 = vmatpush3.bf16.msra.mxu0 %v3020_v30 }
 0x1e6   : > { %2679 = vmatpush3.bf16.msra.mxu1 %v3018_v28 }
 0x1e7   : > { %2720 = vmatprep.subr.bf16.mxu1 %v3021_v31 }
 0x298   : > { %v2896_v33 = vpop.f32.mrb[4].mxu0 }
 0x299   : > { %v1005_v35 = vpop.f32.mrb[5].mxu0 }
 0x29a   : > { %v2897_v37 = vpop.f32.mrb[6].mxu0 }
 0x29b   : > { %v1008_v38 = vpop.f32.mrb[7].mxu0 }
 0x29c   : > { %v2642_v39 = vpop.f32.mrb[0].mxu1 }
 0x29d   : > { %v2643_v41 = vpop.f32.mrb[1].mxu1 }
 0x29e   : > { %v2644_v43 = vadd.f32 %v2643_v41, %v2642_v39  ;;  %v2645_v44 = vpop.f32.mrb[2].mxu1  ;;  %v3023_v41 = vld [vmem:[#allocation4 + $0x148] sm:$0xff]  }
 0x29f   : > { %v2646_v45 = vpop.f32.mrb[3].mxu1 }
 0x2a0   : > { %v957_v18 = vadd.f32 %v2644_v43, %v777_v40  ;;  %v2647_v46 = vadd.f32 %v2646_v45, %v2645_v44 }
 0x2a2   : > { %v1006_v48 = vadd.f32 %v1005_v35, %v957_v18  ;;  %v960_v50 = vadd.f32 %v2647_v46, %v777_v40  ;;  %v3024_v18 = vld [vmem:[#allocation4 + $0x108] sm:$0xff]  }
 0x2a4   : > { %v1020_v51 = vmax.f32 %v1006_v48, 0.0  ;;  %v1009_v52 = vadd.f32 %v1008_v38, %v960_v50  ;;  %v2648_v53 = vpop.f32.mrb[4].mxu1  ;;  %v3025_v48 = vld [vmem:[#allocation4 + $0x150] sm:$0xff]   ;;  %v3027_v50 = vld [vmem:[#allocation4 + $0x158] sm:$0xff]  }
 0x2a5   : > { %v2649_v54 = vpop.f32.mrb[5].mxu1 }
 0x2a6   : > { %v1028_v55 = vmul.f32 %v1027_v49, %v1020_v51  ;;  %v1021_v57 = vmax.f32 %v1009_v52, 0.0  ;;  %v2650_v58 = vadd.f32 %v2649_v54, %v2648_v53  ;;  %v2651_v59 = vpop.f32.mrb[6].mxu1  ;;  %v3028_v51 = vld [vmem:[#allocation4 + $0x118] sm:$0xff]   ;;  %v3029_v52 = vld [vmem:[#allocation4 + $0x160] sm:$0xff]   ;;  %v3031_v54 = vld [vmem:[#allocation4 + $0x168] sm:$0xff]  }
 0x2a7   : > { %v2652_v60 = vpop.f32.mrb[7].mxu1  ;;  %v3030_v53 = vld [vmem:[#allocation4 + $0x120] sm:$0xff]  }
 0x2a8   : > { %v1029_v61 = vmul.f32 %v1027_v49, %v1021_v57  ;;  %v965_v62 = vadd.f32 %v2650_v58, %v777_v40  ;;  %v2653_v63 = vadd.f32 %v2652_v60, %v2651_v59  ;;  %v1036_v0 = vadd.f32 %v1035_v56, %v1028_v55  ;;  %v3032_v55 = vld [vmem:[#allocation4 + $0x128] sm:$0xff]   ;;  %v3034_v57 = vld [vmem:[#allocation4 + $0x130] sm:$0xff]   ;;  %v3035_v58 = vld [vmem:[#allocation4 + $0x178] sm:$0xff]  }
 0x2a9   : > { %v3036_v59 = vld [vmem:[#allocation4 + $0x138] sm:$0xff]   ;;  %v3037_v60 = vld [vmem:[#allocation6 + $0x40] sm:$0xff]  }
 0x2aa   : > { %v1037_v1 = vadd.f32 %v1035_v56, %v1029_v61  ;;  %v1014_v2 = vadd.f32 %v2896_v33, %v965_v62  ;;  %v968_v3 = vadd.f32 %v2653_v63, %v777_v40  ;;  %v3038_v61 = vld [vmem:[#allocation6] sm:$0xff]   ;;  %2748 = vmatprep.subr.bf16.mxu0 %v3037_v60 }
 0x2ab   : > { %v3039_v62 = vld [vmem:[#allocation6 + $0xc0] sm:$0xff]  }
 0x2ac   : > { %v1040_v4 = vpack.c.bf16 %v1037_v1, %v1036_v0  ;;  %v1022_v5 = vmax.f32 %v1014_v2, 0.0  ;;  %v1017_v6 = vadd.f32 %v2897_v37, %v968_v3  ;;  %v3040_v63 = vld [vmem:[#allocation6 + $0x80] sm:$0xff]   ;;  %v3041_v0 = vld [vmem:[#allocation6 + $0x48] sm:$0xff]  }
 0x2ad   : > { %v3042_v1 = vld [vmem:[#allocation6 + $0x8] sm:$0xff]  }
 0x2ae   : > { %v1030_v7 = vmul.f32 %v1027_v49, %v1022_v5  ;;  %v1023_v8 = vmax.f32 %v1017_v6, 0.0  ;;  %v1045_v9 = vshll.u32 %v1040_v4, 16  ;;  %v1043_v11 = vshrl.u32 %v1040_v4, 16  ;;  %v3043_v2 = vld [vmem:[#allocation6 + $0xc8] sm:$0xff]   ;;  %v3046_v5 = vld [vmem:[#allocation6 + $0x10] sm:$0xff]  }
 0x2af   : > { %v1061_v19 = vrot.slane %v1040_v4, 1  ;;  %v1077_v27 = vrot.slane %v1040_v4, 2  ;;  %v3044_v3 = vld [vmem:[#allocation6 + $0x88] sm:$0xff]   ;;  %v3047_v6 = vld [vmem:[#allocation6 + $0xd0] sm:$0xff]  }
 0x2b0   : > { %v1031_v10 = vmul.f32 %v1027_v49, %v1023_v8  ;;  %v1038_v12 = vadd.f32 %v1035_v56, %v1030_v7  ;;  %v1047_v14 = vrot.slane %v1045_v9, 1  ;;  %v1067_v16 = vrot.slane %v1043_v11, 1  ;;  %v3026_v49 = vld [vmem:[#allocation4 + $0x110] sm:$0xff]   ;;  %v3049_v8 = vld [vmem:[#allocation6 + $0x58] sm:$0xff]  }
 0x2b1   : > { %v1068_v17 = vrot.slane %v1045_v9, 2  ;;  %v1083_v25 = vrot.slane %v1043_v11, 2  ;;  %v1084_v26 = vrot.slane %v1045_v9, 3  ;;  %v3048_v7 = vld [vmem:[#allocation6 + $0x90] sm:$0xff]   ;;  %v3050_v9 = vld [vmem:[#allocation6 + $0x18] sm:$0xff]  }
 0x2b2   : > { %v1039_v13 = vadd.f32 %v1035_v56, %v1031_v10  ;;  %v1048_v24 = vor.u32 %v1047_v14, %v1043_v11  ;;  %v3033_v56 = vld [vmem:[#allocation4 + $0x170] sm:$0xff]   ;;  %v3051_v10 = vld [vmem:[#allocation6 + $0xd8] sm:$0xff]   ;;  %v3055_v14 = vld [vmem:[#allocation6 + $0xe0] sm:$0xff]  }
 0x2b3   : > { %v1069_v39 = vor.u32 %v1068_v17, %v1067_v16  ;;  %v1085_v43 = vor.u32 %v1084_v26, %v1083_v25  ;;  %v3052_v11 = vld [vmem:[#allocation6 + $0x98] sm:$0xff]   ;;  %v3057_v16 = vld [vmem:[#allocation6 + $0x68] sm:$0xff]  }
 0x2b4   : > { %v3407_v15 = vpack.c.bf16 %v1039_v13, %v1038_v12  ;;  %v3053_v12 = vld [vmem:[#allocation6 + $0x60] sm:$0xff]   ;;  %v3058_v17 = vld [vmem:[#allocation6 + $0x28] sm:$0xff]   ;;  %v3065_v25 = vld [vmem:[#allocation6 + $0x78] sm:$0xff]  }
 0x2b5   : > { %v3054_v13 = vld [vmem:[#allocation6 + $0x20] sm:$0xff]   ;;  %v3066_v26 = vld [vmem:[#allocation6 + $0x38] sm:$0xff]  }
 0x2b6   : > { %v1050_v20 = vshll.u32 %v3407_v15, 16  ;;  %v1054_v21 = vshrl.u32 %v3407_v15, 16  ;;  %v1062_v22 = vrot.slane %v3407_v15, 1  ;;  %v1078_v23 = vrot.slane %v3407_v15, 2 }
 0x2b8   : > { %v1052_v28 = vrot.slane %v1050_v20, 1  ;;  %v1070_v29 = vrot.slane %v1054_v21, 1  ;;  %v1071_v30 = vrot.slane %v1050_v20, 2  ;;  %v1063_v31 = vsel %vm768_vm5, %v1061_v19, %v1062_v22  ;;  %v3059_v19 = vld [vmem:[#allocation6 + $0xe8] sm:$0xff]  }
 0x2b9   : > { %v1086_v33 = vrot.slane %v1054_v21, 2  ;;  %v1087_v35 = vrot.slane %v1050_v20, 3  ;;  %v1079_v36 = vsel %vm1076_vm7, %v1077_v27, %v1078_v23  ;;  %v3060_v20 = vld [vmem:[#allocation6 + $0xa8] sm:$0xff]   ;;  %v3067_v27 = vld [vmem:[#allocation6 + $0xf8] sm:$0xff]  }
 0x2ba   : > { %v1053_v37 = vsel %vm748_vm6, %v1048_v24, %v1052_v28  ;;  %v1056_v38 = vor.u32 %v1054_v21, %v1052_v28  ;;  %v1072_v40 = vor.u32 %v1071_v30, %v1070_v29  ;;  %v3061_v21 = vld [vmem:[#allocation6 + $0x70] sm:$0xff]   ;;  %v3068_v28 = vld [vmem:[#allocation6 + $0xb8] sm:$0xff]   ;;  %v3069_v29 = vld [vmem:[#allocation6 + $0x140] sm:$0xff]  }
 0x2bb   : > { %1416 = vmatprep.mubr.bf16.mxu1 %v1053_v37  ;;  %v1088_v44 = vor.u32 %v1087_v35, %v1086_v33  ;;  %v3064_v24 = vld [vmem:[#allocation6 + $0xb0] sm:$0xff]   ;;  %v3071_v30 = vld [vmem:[#allocation6 + $0x1c0] sm:$0xff]  }
 0x2bc   : > { %1417 = vmatmul.mubr.bf16.vlgmr.msra.gmra.mrb[8].mxu1 %v1040_v4  ;;  %v1073_v45 = vsel %vm1066_vm8, %v1069_v39, %v1072_v40  ;;  %v3045_v4 = vld [vmem:[#allocation6 + $0x50] sm:$0xff]  }
 0x2bd   : > { %2721 = vmatpush3.bf16.msra.mxu1 %v3022_v32  ;;  %1424 = vmatprep.mubr.bf16.mxu1 %v1056_v38  ;;  %v1089_v46 = vsel %vm1082_vm9, %v1085_v43, %v1088_v44 }
 0x2be   : > { %1465 = vmatprep.mubr.bf16.mxu0 %v1073_v45  ;;  %2722 = vmatprep.subr.bf16.mxu1 %v3023_v41 }
 0x2bf   : > { %1466 = vmatmul.mubr.bf16.vlgmr.msra.gmra.mrb[8].mxu0 %v1063_v31  ;;  %v644_v31 = vld [vmem:[%s3535_s6] sm:$0x7] }
 0x2c0   : > { %1473 = vmatprep.mubr.bf16.mxu0 %v1072_v40  ;;  %2749 = vmatpush3.bf16.msra.mxu0 %v3038_v61  ;;  %v1095_v33 = vrot.slane %v644_v31, %v3395_v34 }
 0x2c1   : > { %2723 = vmatpush3.bf16.msra.mxu1 %v3024_v18  ;;  %2750 = vmatprep.subr.bf16.mxu0 %v3041_v0 }
 0x2c2   : > { %2724 = vmatprep.subr.bf16.mxu1 %v3025_v48 }
 0x2c4   : > { %1425 = vmatmul.mubr.bf16.gmra.mrb[12].mxu1 %v3407_v15  ;;  %2751 = vmatpush3.bf16.msra.mxu0 %v3042_v1  ;;  %v3056_v15 = vld [vmem:[#allocation6 + $0xa0] sm:$0xff]  }
 0x2c5   : > { %2725 = vmatpush3.bf16.msra.mxu1 %v3026_v49  ;;  %1514 = vmatprep.mubr.bf16.mxu1 %v1089_v46 }
 0x2c6   : > { %2726 = vmatprep.subr.bf16.mxu1 %v3027_v50  ;;  %2752 = vmatprep.subr.bf16.mxu0 %v3045_v4 }
 0x2c7   : > { %1474 = vmatmul.mubr.bf16.gmra.mrb[12].mxu0 %v1062_v22  ;;  %v3062_v22 = vld [vmem:[#allocation6 + $0x30] sm:$0xff]  }
 0x2c8   : > { %2753 = vmatpush3.bf16.msra.mxu0 %v3046_v5 }
 0x2c9   : > { %2727 = vmatpush3.bf16.msra.mxu1 %v3028_v51  ;;  %2754 = vmatprep.subr.bf16.mxu0 %v3049_v8 }
 0x2ca   : > { %2728 = vmatprep.subr.bf16.mxu1 %v3029_v52 }
 0x2cc   : > { %2755 = vmatpush3.bf16.msra.mxu0 %v3050_v9  ;;  %v1538_v9 = vrot.slane %v644_v31, %v3401_v42 }
 0x2cd   : > { %2729 = vmatpush3.bf16.msra.mxu1 %v3030_v53  ;;  %2756 = vmatprep.subr.bf16.mxu0 %v3053_v12 }
 0x2ce   : > { %2730 = vmatprep.subr.bf16.mxu1 %v3031_v54 }
 0x2d0   : > { %2757 = vmatpush3.bf16.msra.mxu0 %v3054_v13 }
 0x2d1   : > { %2731 = vmatpush3.bf16.msra.mxu1 %v3032_v55  ;;  %2758 = vmatprep.subr.bf16.mxu0 %v3057_v16 }
 0x2d2   : > { %2732 = vmatprep.subr.bf16.mxu1 %v3033_v56 }
 0x2d4   : > { %2759 = vmatpush3.bf16.msra.mxu0 %v3058_v17 }
 0x2d5   : > { %2733 = vmatpush3.bf16.msra.mxu1 %v3034_v57  ;;  %2760 = vmatprep.subr.bf16.mxu0 %v3061_v21 }
 0x2d6   : > { %2734 = vmatprep.subr.bf16.mxu1 %v3035_v58 }
 0x2d8   : > { %2761 = vmatpush3.bf16.msra.mxu0 %v3062_v22 }
 0x2d9   : > { %2735 = vmatpush3.bf16.msra.mxu1 %v3036_v59  ;;  %2762 = vmatprep.subr.bf16.mxu0 %v3065_v25 }
 0x2da   : > { %2776 = vmatprep.subr.bf16.mxu1 %v3039_v62 }
 0x2dc   : > { %1515 = vmatmul.mubr.bf16.vlgmr.msra.gmra.mrb[16].mxu1 %v1079_v36  ;;  %2763 = vmatpush3.bf16.msra.mxu0 %v3066_v26 }
 0x2dd   : > { %1522 = vmatprep.mubr.bf16.mxu1 %v1088_v44  ;;  %2777 = vmatpush3.bf16.msra.mxu1 %v3040_v63 }
 0x2de   : > { %2778 = vmatprep.subr.bf16.mxu1 %v3043_v2  ;;  %2804 = vmatprep.subr.bf16.mxu0 %v3069_v29 }
 0x2e1   : > { %2779 = vmatpush3.bf16.msra.mxu1 %v3044_v3 }
 0x2e2   : > { %2780 = vmatprep.subr.bf16.mxu1 %v3047_v6 }
 0x2e4   : > { %1523 = vmatmul.mubr.bf16.gmra.mrb[20].mxu1 %v1078_v23  ;;  %v3063_v23 = vld [vmem:[#allocation6 + $0xf0] sm:$0xff]  }
 0x2e5   : > { %2781 = vmatpush3.bf16.msra.mxu1 %v3048_v7 }
 0x2e6   : > { %2782 = vmatprep.subr.bf16.mxu1 %v3051_v10 }
 0x2e9   : > { %2783 = vmatpush3.bf16.msra.mxu1 %v3052_v11 }
 0x2ea   : > { %2784 = vmatprep.subr.bf16.mxu1 %v3055_v14  ;;  %v1546_v14 = vrot.slane %v644_v31, %v3403_v47 }
 0x2ed   : > { %2785 = vmatpush3.bf16.msra.mxu1 %v3056_v15 }
 0x2ee   : > { %2786 = vmatprep.subr.bf16.mxu1 %v3059_v19 }
 0x2f1   : > { %2787 = vmatpush3.bf16.msra.mxu1 %v3060_v20 }
 0x2f2   : > { %2788 = vmatprep.subr.bf16.mxu1 %v3063_v23 }
 0x2f5   : > { %2789 = vmatpush3.bf16.msra.mxu1 %v3064_v24 }
 0x2f6   : > { %2790 = vmatprep.subr.bf16.mxu1 %v3067_v27 }
 0x2f9   : > { %2791 = vmatpush3.bf16.msra.mxu1 %v3068_v28 }
 0x2fa   : > { %2832 = vmatprep.subr.bf16.mxu1 %v3071_v30 }
 0x38f   : > { %v2680_v32 = vpop.f32.mrb[8].mxu1 }
 0x390   : > { %v2681_v35 = vpop.f32.mrb[9].mxu1 }
 0x391   : > { %v2682_v36 = vadd.f32 %v2681_v35, %v2680_v32  ;;  %v2683_v37 = vpop.f32.mrb[10].mxu1 }
 0x392   : > { %v2708_v38 = vpop.f32.mrb[8].mxu0  ;;  %v2684_v39 = vpop.f32.mrb[11].mxu1 }
 0x393   : > { %v1419_v40 = vadd.f32 %v2682_v36, %v1095_v33  ;;  %v2685_v41 = vadd.f32 %v2684_v39, %v2683_v37  ;;  %v2709_v43 = vpop.f32.mrb[9].mxu0 }
 0x394   : > { %v2710_v44 = vadd.f32 %v2709_v43, %v2708_v38  ;;  %v2711_v45 = vpop.f32.mrb[10].mxu0 }
 0x395   : > { %v1422_v18 = vadd.f32 %v2685_v41, %v1095_v33  ;;  %v2712_v46 = vpop.f32.mrb[11].mxu0 }
 0x396   : > { %v1468_v48 = vadd.f32 %v2710_v44, %v1419_v40  ;;  %v2713_v49 = vadd.f32 %v2712_v46, %v2711_v45 }
 0x397   : > { %v2686_v50 = vpop.f32.mrb[12].mxu1 }
 0x398   : > { %v1471_v51 = vadd.f32 %v2713_v49, %v1422_v18  ;;  %v2687_v52 = vpop.f32.mrb[13].mxu1 }
 0x399   : > { %v2688_v53 = vadd.f32 %v2687_v52, %v2686_v50  ;;  %v2689_v54 = vpop.f32.mrb[14].mxu1 }
 0x39a   : > { %v2714_v55 = vpop.f32.mrb[12].mxu0  ;;  %v2690_v56 = vpop.f32.mrb[15].mxu1 }
 0x39b   : > { %v1427_v57 = vadd.f32 %v2688_v53, %v1095_v33  ;;  %v2691_v58 = vadd.f32 %v2690_v56, %v2689_v54  ;;  %v2715_v59 = vpop.f32.mrb[13].mxu0 }
 0x39c   : > { %v2716_v60 = vadd.f32 %v2715_v59, %v2714_v55  ;;  %v2717_v61 = vpop.f32.mrb[14].mxu0 }
 0x39d   : > { %v1430_v62 = vadd.f32 %v2691_v58, %v1095_v33  ;;  %v2718_v63 = vpop.f32.mrb[15].mxu0 }
 0x39e   : > { %v1476_v0 = vadd.f32 %v2716_v60, %v1427_v57  ;;  %v2719_v1 = vadd.f32 %v2718_v63, %v2717_v61 }
 0x3a0   : > { %v1479_v2 = vadd.f32 %v2719_v1, %v1430_v62 }
 0x3af   : > { %v2736_v3 = vpop.f32.mrb[16].mxu1 }
 0x3b0   : > { %v2737_v4 = vpop.f32.mrb[17].mxu1 }
 0x3b1   : > { %v2738_v5 = vadd.f32 %v2737_v4, %v2736_v3  ;;  %v2739_v6 = vpop.f32.mrb[18].mxu1 }
 0x3b2   : > { %v2740_v7 = vpop.f32.mrb[19].mxu1 }
 0x3b3   : > { %v1517_v8 = vadd.f32 %v2738_v5, %v1468_v48  ;;  %v2741_v10 = vadd.f32 %v2740_v7, %v2739_v6  ;;  %v3073_v7 = vld [vmem:[#allocation6 + $0x148] sm:$0xff]  }
 0x3b5   : > { %v1531_v11 = vmax.f32 %v1517_v8, 0.0  ;;  %v1520_v12 = vadd.f32 %v2741_v10, %v1471_v51 }
 0x3b7   : > { %v1539_v13 = vmul.f32 %v1538_v9, %v1531_v11  ;;  %v1532_v15 = vmax.f32 %v1520_v12, 0.0  ;;  %v2742_v16 = vpop.f32.mrb[20].mxu1 }
 0x3b8   : > { %v2743_v17 = vpop.f32.mrb[21].mxu1 }
 0x3b9   : > { %v1540_v19 = vmul.f32 %v1538_v9, %v1532_v15  ;;  %v2744_v20 = vadd.f32 %v2743_v17, %v2742_v16  ;;  %v2745_v21 = vpop.f32.mrb[22].mxu1  ;;  %v1547_v23 = vadd.f32 %v1546_v14, %v1539_v13  ;;  %v3072_v15 = vld [vmem:[#allocation6 + $0x180] sm:$0xff]   ;;  %v3074_v16 = vld [vmem:[#allocation6 + $0x108] sm:$0xff]  }
 0x3ba   : > { %v2746_v22 = vpop.f32.mrb[23].mxu1  ;;  %v3075_v17 = vld [vmem:[#allocation6 + $0x1c8] sm:$0xff]  }
 0x3bb   : > { %v1548_v24 = vadd.f32 %v1546_v14, %v1540_v19  ;;  %v1525_v25 = vadd.f32 %v2744_v20, %v1476_v0  ;;  %v2747_v26 = vadd.f32 %v2746_v22, %v2745_v21  ;;  %v3070_v0 = vld [vmem:[#allocation6 + $0x100] sm:$0xff]   ;;  %v3077_v21 = vld [vmem:[#allocation6 + $0x150] sm:$0xff]   ;;  %v3076_v22 = vld [vmem:[#allocation6 + $0x188] sm:$0xff]  }
 0x3bd   : > { %v1551_v27 = vpack.c.bf16 %v1548_v24, %v1547_v23  ;;  %v1533_v28 = vmax.f32 %v1525_v25, 0.0  ;;  %v1528_v29 = vadd.f32 %v2747_v26, %v1479_v2  ;;  %v3078_v23 = vld [vmem:[#allocation6 + $0x110] sm:$0xff]   ;;  %v3081_v25 = vld [vmem:[#allocation6 + $0x158] sm:$0xff]  }
 0x3be   : > { %v3079_v24 = vld [vmem:[#allocation6 + $0x1d0] sm:$0xff]  }
 0x3bf   : > { %v1541_v30 = vmul.f32 %v1538_v9, %v1533_v28  ;;  %v1534_v32 = vmax.f32 %v1528_v29, 0.0  ;;  %v1556_v33 = vshll.u32 %v1551_v27, 16  ;;  %v1554_v35 = vshrl.u32 %v1551_v27, 16  ;;  %v3080_v26 = vld [vmem:[#allocation6 + $0x190] sm:$0xff]   ;;  %v3083_v28 = vld [vmem:[#allocation6 + $0x1d8] sm:$0xff]   ;;  %v3085_v29 = vld [vmem:[#allocation6 + $0x160] sm:$0xff]  }
 0x3c0   : > { %v1571_v45 = vrot.slane %v1551_v27, 1  ;;  %v1585_v18 = vrot.slane %v1551_v27, 2  ;;  %v1600_v46 = vrot.slane %v1551_v27, 3  ;;  %v1616_v51 = vrot.slane %v1551_v27, 4 }
 0x3c1   : > { %v1542_v36 = vmul.f32 %v1538_v9, %v1534_v32  ;;  %v1558_v31 = vrot.slane %v1556_v33, 1  ;;  %v1549_v37 = vadd.f32 %v1546_v14, %v1541_v30  ;;  %v1576_v39 = vrot.slane %v1554_v35, 1  ;;  %v3084_v30 = vld [vmem:[#allocation6 + $0x198] sm:$0xff]   ;;  %v3086_v32 = vld [vmem:[#allocation6 + $0x120] sm:$0xff]  }
 0x3c2   : > { %v1577_v40 = vrot.slane %v1556_v33, 2  ;;  %v1590_v41 = vrot.slane %v1554_v35, 2  ;;  %v1591_v43 = vrot.slane %v1556_v33, 3  ;;  %v1606_v49 = vrot.slane %v1554_v35, 3 }
 0x3c3   : > { %v1550_v38 = vadd.f32 %v1546_v14, %v1542_v36  ;;  %v1559_v48 = vor.u32 %v1558_v31, %v1554_v35  ;;  %v1607_v50 = vrot.slane %v1556_v33, 4  ;;  %v3087_v33 = vld [vmem:[#allocation6 + $0x1e0] sm:$0xff]   ;;  %v3089_v35 = vld [vmem:[#allocation6 + $0x168] sm:$0xff]  }
 0x3c4   : > { %v1578_v56 = vor.u32 %v1577_v40, %v1576_v39  ;;  %v1592_v57 = vor.u32 %v1591_v43, %v1590_v41  ;;  %v3088_v36 = vld [vmem:[#allocation6 + $0x1a0] sm:$0xff]   ;;  %v3090_v31 = vld [vmem:[#allocation6 + $0x128] sm:$0xff]   ;;  %v3094_v40 = vld [vmem:[#allocation6 + $0x130] sm:$0xff]  }
 0x3c5   : > { %v3425_v44 = vpack.c.bf16 %v1550_v38, %v1549_v37  ;;  %v1608_v11 = vor.u32 %v1607_v50, %v1606_v49  ;;  %v3091_v37 = vld [vmem:[#allocation6 + $0x1e8] sm:$0xff]   ;;  %v3093_v38 = vld [vmem:[#allocation6 + $0x170] sm:$0xff]   ;;  %v3097_v43 = vld [vmem:[#allocation6 + $0x178] sm:$0xff]  }
 0x3c6   : > { %v3092_v39 = vld [vmem:[#allocation6 + $0x1a8] sm:$0xff]   ;;  %v3095_v41 = vld [vmem:[#allocation6 + $0x1f0] sm:$0xff]   ;;  %v3100_v49 = vld [vmem:[#allocation6 + $0x1b8] sm:$0xff]  }
 0x3c7   : > { %v1561_v52 = vshll.u32 %v3425_v44, 16  ;;  %v3429_v53 = vshrl.u32 %v3425_v44, 16  ;;  %v1572_v54 = vrot.slane %v3425_v44, 1  ;;  %v1586_v55 = vrot.slane %v3425_v44, 2  ;;  %v3102_v50 = vld [vmem:[#allocation6 + $0x208] sm:$0xff]  }
 0x3c8   : > { %v1601_v58 = vrot.slane %v3425_v44, 3  ;;  %v1617_v59 = vrot.slane %v3425_v44, 4 }
 0x3c9   : > { %v1563_v60 = vrot.slane %v1561_v52, 1  ;;  %v1579_v61 = vrot.slane %v3429_v53, 1  ;;  %v1580_v62 = vrot.slane %v1561_v52, 2  ;;  %v1573_v63 = vsel %vm768_vm5, %v1571_v45, %v1572_v54  ;;  %v3096_v45 = vld [vmem:[#allocation6 + $0x1b0] sm:$0xff]  }
 0x3ca   : > { %v1593_v1 = vrot.slane %v3429_v53, 2  ;;  %v1594_v2 = vrot.slane %v1561_v52, 3  ;;  %v1609_v3 = vrot.slane %v3429_v53, 3  ;;  %v1610_v4 = vrot.slane %v1561_v52, 4  ;;  %v3104_v52 = vld [vmem:[#allocation6 + $0x218] sm:$0xff]  }
 0x3cb   : > { %v1564_v5 = vsel %vm748_vm6, %v1559_v48, %v1563_v60  ;;  %v1581_v6 = vor.u32 %v1580_v62, %v1579_v61  ;;  %v3443_v8 = vsel %vm1076_vm7, %v1585_v18, %v1586_v55  ;;  %v3448_v9 = vsel %vm1599_vm10, %v1600_v46, %v1601_v58  ;;  %v3098_v18 = vld [vmem:[#allocation6 + $0x138] sm:$0xff]   ;;  %v3101_v48 = vld [vmem:[#allocation6 + $0x200] sm:$0xff]  }
 0x3cc   : > { %2089 = vmatprep.mubr.bf16.mxu0 %v1564_v5  ;;  %v1595_v10 = vor.u32 %v1594_v2, %v1593_v1  ;;  %v1611_v12 = vor.u32 %v1610_v4, %v1609_v3  ;;  %v3457_v13 = vsel %vm1615_vm12, %v1616_v51, %v1617_v59  ;;  %v3099_v46 = vld [vmem:[#allocation6 + $0x1f8] sm:$0xff]   ;;  %v3103_v51 = vld [vmem:[#allocation6 + $0x210] sm:$0xff]  }
 0x3cd   : > { %2090 = vmatmul.mubr.bf16.vlgmr.msra.gmra.mrb[16].mxu0 %v1551_v27  ;;  %v1582_v14 = vsel %vm1066_vm8, %v1578_v56, %v1581_v6  ;;  %v3082_v27 = vld [vmem:[#allocation6 + $0x118] sm:$0xff]   ;;  %v3106_v56 = vld [vmem:[#allocation6 + $0x228] sm:$0xff]  }
 0x3ce   : > { %2805 = vmatpush3.bf16.msra.mxu0 %v3070_v0  ;;  %2097 = vmatprep.mubr.bf16.mxu0 %v3429_v53  ;;  %v1596_v19 = vsel %vm1082_vm9, %v1592_v57, %v1595_v10  ;;  %v1612_v20 = vsel %vm1605_vm11, %v1608_v11, %v1611_v12  ;;  %v3107_v53 = vld [vmem:[#allocation6 + $0x230] sm:$0xff]   ;;  %v3108_v57 = vld [vmem:[#allocation6 + $0x238] sm:$0xff]  }
 0x3cf   : > { %2137 = vmatprep.mubr.bf16.mxu1 %v1582_v14  ;;  %2806 = vmatprep.subr.bf16.mxu0 %v3073_v7 }
 0x3d0   : > { %2138 = vmatmul.mubr.bf16.vlgmr.msra.gmra.mrb[24].mxu1 %v1573_v63 }
 0x3d1   : > { %2833 = vmatpush3.bf16.msra.mxu1 %v3072_v15  ;;  %2145 = vmatprep.mubr.bf16.mxu1 %v1579_v61 }
 0x3d2   : > { %2807 = vmatpush3.bf16.msra.mxu0 %v3074_v16  ;;  %2834 = vmatprep.subr.bf16.mxu1 %v3075_v17 }
 0x3d3   : > { %2808 = vmatprep.subr.bf16.mxu0 %v3077_v21 }
 0x3d5   : > { %2835 = vmatpush3.bf16.msra.mxu1 %v3076_v22  ;;  %2098 = vmatmul.mubr.bf16.gmra.mrb[20].mxu0 %v3425_v44 }
 0x3d6   : > { %2809 = vmatpush3.bf16.msra.mxu0 %v3078_v23  ;;  %2185 = vmatprep.mubr.bf16.mxu0 %v1596_v19 }
 0x3d7   : > { %2836 = vmatprep.subr.bf16.mxu1 %v3079_v24  ;;  %2810 = vmatprep.subr.bf16.mxu0 %v3081_v25 }
 0x3d8   : > { %2146 = vmatmul.mubr.bf16.gmra.mrb[28].mxu1 %v1572_v54  ;;  %v3105_v54 = vld [vmem:[#allocation6 + $0x220] sm:$0xff]  }
 0x3d9   : > { %2837 = vmatpush3.bf16.msra.mxu1 %v3080_v26  ;;  %2233 = vmatprep.mubr.bf16.mxu1 %v1612_v20 }
 0x3da   : > { %2811 = vmatpush3.bf16.msra.mxu0 %v3082_v27  ;;  %2838 = vmatprep.subr.bf16.mxu1 %v3083_v28 }
 0x3db   : > { %2812 = vmatprep.subr.bf16.mxu0 %v3085_v29 }
 0x3dd   : > { %2839 = vmatpush3.bf16.msra.mxu1 %v3084_v30 }
 0x3de   : > { %2813 = vmatpush3.bf16.msra.mxu0 %v3086_v32  ;;  %2840 = vmatprep.subr.bf16.mxu1 %v3087_v33 }
 0x3df   : > { %2814 = vmatprep.subr.bf16.mxu0 %v3089_v35 }
 0x3e1   : > { %2841 = vmatpush3.bf16.msra.mxu1 %v3088_v36 }
 0x3e2   : > { %2815 = vmatpush3.bf16.msra.mxu0 %v3090_v31  ;;  %2842 = vmatprep.subr.bf16.mxu1 %v3091_v37 }
 0x3e3   : > { %2816 = vmatprep.subr.bf16.mxu0 %v3093_v38 }
 0x3e5   : > { %2843 = vmatpush3.bf16.msra.mxu1 %v3092_v39 }
 0x3e6   : > { %2817 = vmatpush3.bf16.msra.mxu0 %v3094_v40  ;;  %2844 = vmatprep.subr.bf16.mxu1 %v3095_v41 }
 0x3e7   : > { %2818 = vmatprep.subr.bf16.mxu0 %v3097_v43 }
 0x3e9   : > { %2845 = vmatpush3.bf16.msra.mxu1 %v3096_v45 }
 0x3ea   : > { %2819 = vmatpush3.bf16.msra.mxu0 %v3098_v18  ;;  %2846 = vmatprep.subr.bf16.mxu1 %v3099_v46 }
 0x3eb   : > { %2898 = vmatprep.subr.bf16.mxu0 %v3101_v48 }
 0x3ed   : > { %2847 = vmatpush3.bf16.msra.mxu1 %v3100_v49  ;;  %2186 = vmatmul.mubr.bf16.vlgmr.msra.gmra.mrb[24].mxu0 %v3443_v8 }
 0x3ee   : > { %2193 = vmatprep.mubr.bf16.mxu0 %v1593_v1  ;;  %2899 = vmatpush3.bf16.msra.mxu0 %v3101_v48 }
 0x3ef   : > { %2900 = vmatprep.subr.bf16.mxu0 %v3102_v50 }
 0x3f0   : > { %2234 = vmatmul.mubr.bf16.vlgmr.msra.gmra.mrb[32].mxu1 %v3448_v9 }
 0x3f1   : > { %2241 = vmatprep.mubr.bf16.mxu1 %v1609_v3 }
 0x3f2   : > { %2901 = vmatpush3.bf16.msra.mxu0 %v3102_v50 }
 0x3f3   : > { %2902 = vmatprep.subr.bf16.mxu0 %v3103_v51 }
 0x3f5   : > { %2194 = vmatmul.mubr.bf16.gmra.mrb[28].mxu0 %v1586_v55  ;;  %v3480_v55 = vld [vmem:[%s3536_s7] sm:$0x7] }
 0x3f6   : > { %2903 = vmatpush3.bf16.msra.mxu0 %v3103_v51  ;;  %2914 = vmatprep.mubr.bf16.mxu0 %v3457_v13  ;;  %v1624_v60 = vrot.slane %v3480_v55, %v3395_v34 }
 0x3f7   : > { %2904 = vmatprep.subr.bf16.mxu0 %v3104_v52 }
 0x3f8   : > { %2242 = vmatmul.mubr.bf16.gmra.mrb[36].mxu1 %v1601_v58 }
 0x3fa   : > { %2905 = vmatpush3.bf16.msra.mxu0 %v3104_v52 }
 0x3fb   : > { %2906 = vmatprep.subr.bf16.mxu0 %v3105_v54 }
 0x3fe   : > { %2907 = vmatpush3.bf16.msra.mxu0 %v3105_v54 }
 0x3ff   : > { %2908 = vmatprep.subr.bf16.mxu0 %v3106_v56 }
 0x402   : > { %2909 = vmatpush3.bf16.msra.mxu0 %v3106_v56 }
 0x403   : > { %2910 = vmatprep.subr.bf16.mxu0 %v3107_v53 }
 0x406   : > { %2911 = vmatpush3.bf16.msra.mxu0 %v3107_v53 }
 0x407   : > { %2912 = vmatprep.subr.bf16.mxu0 %v3108_v57 }
 0x40a   : > { %2913 = vmatpush3.bf16.msra.mxu0 %v3108_v57  ;;  %v2303_v57 = vrot.slane %v3480_v55, %v3401_v42 }
 0x40d   : > { %2915 = vmatmul.mubr.bf16.vlgmr.msra.gmra.mrb[32].mxu0 %v1617_v59 }
 0x4a0   : > { %v2764_v58 = vpop.f32.mrb[16].mxu0 }
 0x4a1   : > { %v2765_v61 = vpop.f32.mrb[17].mxu0 }
 0x4a2   : > { %v2766_v62 = vadd.f32 %v2765_v61, %v2764_v58  ;;  %v2767_v63 = vpop.f32.mrb[18].mxu0 }
 0x4a3   : > { %v2792_v0 = vpop.f32.mrb[24].mxu1  ;;  %v2768_v1 = vpop.f32.mrb[19].mxu0 }
 0x4a4   : > { %v2092_v2 = vadd.f32 %v2766_v62, %v1624_v60  ;;  %v2769_v3 = vadd.f32 %v2768_v1, %v2767_v63  ;;  %v2793_v4 = vpop.f32.mrb[25].mxu1  ;;  %v2310_v62 = vrot.slane %v3480_v55, %v3403_v47 }
 0x4a5   : > { %v2794_v5 = vadd.f32 %v2793_v4, %v2792_v0  ;;  %v2795_v44 = vpop.f32.mrb[26].mxu1 }
 0x4a6   : > { %v2095_v59 = vadd.f32 %v2769_v3, %v1624_v60  ;;  %v2796_v6 = vpop.f32.mrb[27].mxu1 }
 0x4a7   : > { %v2140_v7 = vadd.f32 %v2794_v5, %v2092_v2  ;;  %v2797_v8 = vadd.f32 %v2796_v6, %v2795_v44 }
 0x4a8   : > { %v2770_v9 = vpop.f32.mrb[20].mxu0 }
 0x4a9   : > { %v2143_v10 = vadd.f32 %v2797_v8, %v2095_v59  ;;  %v2771_v11 = vpop.f32.mrb[21].mxu0 }
 0x4aa   : > { %v2772_v12 = vadd.f32 %v2771_v11, %v2770_v9  ;;  %v2773_v13 = vpop.f32.mrb[22].mxu0 }
 0x4ab   : > { %v2798_v34 = vpop.f32.mrb[28].mxu1  ;;  %v2774_v14 = vpop.f32.mrb[23].mxu0 }
 0x4ac   : > { %v2100_v15 = vadd.f32 %v2772_v12, %v1624_v60  ;;  %v2799_v16 = vpop.f32.mrb[29].mxu1 }
 0x4ad   : > { %v2800_v17 = vadd.f32 %v2799_v16, %v2798_v34  ;;  %v2801_v19 = vpop.f32.mrb[30].mxu1 }
 0x4ae   : > { %v2802_v20 = vpop.f32.mrb[31].mxu1 }
 0x4af   : > { %v2148_v21 = vadd.f32 %v2800_v17, %v2100_v15 }
 0x4c0   : > { %v2820_v22 = vpop.f32.mrb[24].mxu0 }
 0x4c1   : > { %v2821_v23 = vpop.f32.mrb[25].mxu0 }
 0x4c2   : > { %v2822_v24 = vadd.f32 %v2821_v23, %v2820_v22  ;;  %v2823_v25 = vpop.f32.mrb[26].mxu0 }
 0x4c3   : > { %v2848_v26 = vpop.f32.mrb[32].mxu1  ;;  %v2824_v27 = vpop.f32.mrb[27].mxu0 }
 0x4c4   : > { %v2188_v28 = vadd.f32 %v2822_v24, %v2140_v7  ;;  %v2825_v29 = vadd.f32 %v2824_v27, %v2823_v25  ;;  %v2849_v30 = vpop.f32.mrb[33].mxu1 }
 0x4c5   : > { %v2850_v32 = vadd.f32 %v2849_v30, %v2848_v26  ;;  %v2851_v33 = vpop.f32.mrb[34].mxu1 }
 0x4c6   : > { %v2191_v35 = vadd.f32 %v2825_v29, %v2143_v10  ;;  %v2852_v36 = vpop.f32.mrb[35].mxu1 }
 0x4c7   : > { %v2853_v31 = vadd.f32 %v2852_v36, %v2851_v33  ;;  %v2236_v37 = vadd.f32 %v2850_v32, %v2188_v28 }
 0x4c8   : > { %v2826_v38 = vpop.f32.mrb[28].mxu0 }
 0x4c9   : > { %v2827_v39 = vpop.f32.mrb[29].mxu0  ;;  %v2239_v40 = vadd.f32 %v2853_v31, %v2191_v35 }
 0x4ca   : > { %v2828_v41 = vadd.f32 %v2827_v39, %v2826_v38  ;;  %v2829_v43 = vpop.f32.mrb[30].mxu0 }
 0x4cb   : > { %v2854_v45 = vpop.f32.mrb[36].mxu1  ;;  %v2830_v18 = vpop.f32.mrb[31].mxu0 }
 0x4cc   : > { %v2196_v46 = vadd.f32 %v2828_v41, %v2148_v21  ;;  %v2855_v48 = vpop.f32.mrb[37].mxu1 }
 0x4cd   : > { %v2856_v49 = vadd.f32 %v2855_v48, %v2854_v45  ;;  %v2857_v50 = vpop.f32.mrb[38].mxu1 }
 0x4ce   : > { %v2858_v51 = vpop.f32.mrb[39].mxu1 }
 0x4cf   : > { %v2244_v52 = vadd.f32 %v2856_v49, %v2196_v46 }
 0x4e0   : > { %v2916_v54 = vpop.f32.mrb[32].mxu0 }
 0x4e1   : > { %v2292_v56 = vadd.f32 %v2916_v54, %v2244_v52  ;;  %v2283_v53 = vpop.f32.mrb[33].mxu0 }
 0x4e2   : > { %v2284_v58 = vadd.f32 %v2283_v53, %v2236_v37  ;;  %v2917_v60 = vpop.f32.mrb[34].mxu0 }
 0x4e3   : > { %v2286_v61 = vpop.f32.mrb[35].mxu0  ;;  %v2299_v1 = vmax.f32 %v2292_v56, 0.0 }
 0x4e4   : > { %v2297_v63 = vmax.f32 %v2284_v58, 0.0  ;;  %v2287_v0 = vadd.f32 %v2286_v61, %v2239_v40 }
 0x4e5   : > { %v2306_v44 = vmul.f32 %v2303_v57, %v2299_v1 }
 0x4e6   : > { %v2304_v2 = vmul.f32 %v2303_v57, %v2297_v63  ;;  %v2298_v3 = vmax.f32 %v2287_v0, 0.0 }
 0x4e7   : > { %v2313_v6 = vadd.f32 %v2310_v62, %v2306_v44 }
 0x4e8   : > { %v2305_v4 = vmul.f32 %v2303_v57, %v2298_v3  ;;  %v2311_v5 = vadd.f32 %v2310_v62, %v2304_v2 }
 0x4e9   : > { %v2315_v42 = vsel %vm2314_vm13, %v2313_v6, 0.0 }
 0x4ea   : > { %2316 = vxpose.xlu0.b32.start [1/3] (short) %v2311_v5, 128  ;;  %v2312_v59 = vadd.f32 %v2310_v62, %v2305_v4 }
 0x4ee   : > { %2317 = vxpose.xlu0.b32.cont [2/3] (short) %v2312_v59, 128 }
 0x4f2   : > { %2318 = vxpose.xlu0.b32.end [3/3] (short) %v2315_v42, 128 }
 0x56a   : > { %v2332_v47 = vpop.trf.xlu0 }
 0x56b   : > { %2349 = vst.msk [vmem:[%s3492_s11] sm:$0xff] %vm2348_vm14, %v2332_v47 }
 0x56e   : > { %v2333_v55 = vpop.trf.xlu0 }
 0x56f   : > { %2350 = vst.msk [vmem:[%s3492_s11 + $0x8] sm:$0xff] %vm2348_vm14, %v2333_v55 }
 0x572   : > { %v2334_v7 = vpop.trf.xlu0 }
 0x573   : > { %2351 = vst.msk [vmem:[%s3492_s11 + $0x10] sm:$0xff] %vm2348_vm14, %v2334_v7 }
 0x576   : > { %v2335_v8 = vpop.trf.xlu0 }
 0x577   : > { %2352 = vst.msk [vmem:[%s3492_s11 + $0x18] sm:$0xff] %vm2348_vm14, %v2335_v8 }
 0x57a   : > { %v2336_v9 = vpop.trf.xlu0 }
 0x57b   : > { %2353 = vst.msk [vmem:[%s3492_s11 + $0x20] sm:$0xff] %vm2348_vm14, %v2336_v9 }
 0x57e   : > { %v2337_v10 = vpop.trf.xlu0 }
 0x57f   : > { %2354 = vst.msk [vmem:[%s3492_s11 + $0x28] sm:$0xff] %vm2348_vm14, %v2337_v10 }
 0x582   : > { %v2338_v11 = vpop.trf.xlu0 }
 0x583   : > { %2355 = vst.msk [vmem:[%s3492_s11 + $0x30] sm:$0xff] %vm2348_vm14, %v2338_v11 }
 0x586   : > { %v2339_v12 = vpop.trf.xlu0 }
 0x587   : > { %2356 = vst.msk [vmem:[%s3492_s11 + $0x38] sm:$0xff] %vm2348_vm14, %v2339_v12 }
 0x58a   : > { %v2340_v13 = vpop.trf.xlu0 }
 0x58b   : > { %2357 = vst.msk [vmem:[%s3492_s11 + $0x40] sm:$0xff] %vm2348_vm14, %v2340_v13 }
 0x58e   : > { %v2341_v34 = vpop.trf.xlu0 }
 0x58f   : > { %2358 = vst.msk [vmem:[%s3492_s11 + $0x48] sm:$0xff] %vm2348_vm14, %v2341_v34 }
 0x592   : > { %v2342_v14 = vpop.trf.xlu0 }
 0x593   : > { %2359 = vst.msk [vmem:[%s3492_s11 + $0x50] sm:$0xff] %vm2348_vm14, %v2342_v14 }
 0x596   : > { %v2343_v15 = vpop.trf.xlu0 }
 0x597   : > { %2360 = vst.msk [vmem:[%s3492_s11 + $0x58] sm:$0xff] %vm2348_vm14, %v2343_v15 }
 0x59a   : > { %v2344_v16 = vpop.trf.xlu0 }
 0x59b   : > { %2361 = vst.msk [vmem:[%s3492_s11 + $0x60] sm:$0xff] %vm2348_vm14, %v2344_v16 }
 0x59e   : > { %v2345_v17 = vpop.trf.xlu0 }
 0x59f   : > { %2362 = vst.msk [vmem:[%s3492_s11 + $0x68] sm:$0xff] %vm2348_vm14, %v2345_v17 }
 0x5a2   : > { %v2346_v19 = vpop.trf.xlu0 }
 0x5a3   : > { %2363 = vst.msk [vmem:[%s3492_s11 + $0x70] sm:$0xff] %vm2348_vm14, %v2346_v19 }
 0x5a6   : > { %v2347_v20 = vpop.trf.xlu0 }
 0x5a7   : > { %2364 = vst.msk [vmem:[%s3492_s11 + $0x78] sm:$0xff] %vm2348_vm14, %v2347_v20 }
 0x5a8 PF: > { %s20_s27 = sadd.s32 1, %s3207_s27  }
 0x5a9   : > { %p17_p5 = scmp.ge.s32.totalorder %s20_s27, 4  }
 0x5ab   :  { %19 = sbr.rel (!%p17_p5) target bundleno = 2 (0x2), region = 95 }
 0x5b2   :  { %2386 = vsyncpa [#allocation3], 1 }
 0x5b3   :  { %2388 = vsyncpa [#allocation3 + $0x1], 1 }
 0x5b4   :  { %2389 = vsyncpa [#allocation5], 1 }

</bundles_post_ra>
